<compile_context>
chip_gen: v6e
topology: v6e:2x2x1
jax: 0.10.0
libtpu: 0.0.40
codegen_flags: <defaults>
</compile_context>

<pallas_src>
import math
import numpy as np
import jax
import jax.numpy as jnp
from jax import lax
from jax.experimental import pallas as pl
from jax.experimental.pallas import tpu as pltpu

NOL = 2  # num RNN layers (fixed, as in the PyTorch module)


def brnn_kernel(x_ref, wih0_ref, b0_ref, whh0_ref,
                m1_ref, m2_ref, b1_ref, whh1_ref,
                wout_ref, bout_ref, out_ref):
    S, B, _ = x_ref.shape
    twoH = whh0_ref.shape[0]
    H = twoH // 2
    f32 = jnp.float32

    x = x_ref[...]          # (S, B, 1)
    wih0 = wih0_ref[...]    # (1, 2H)   [fwd | rev] input weights of layer 0
    b0 = b0_ref[...]        # (1, 2H)   b_ih + b_hh, both directions packed
    whh0 = whh0_ref[...]    # (2H, 2H)  block-diag(Whh_f^T, Whh_r^T)
    m1 = m1_ref[...]        # (2H, 2H)  layer-1 input weights (same-order part)
    m2 = m2_ref[...]        # (2H, 2H)  layer-1 input weights (time-reversed part)
    b1 = b1_ref[...]        # (1, 2H)
    whh1 = whh1_ref[...]    # (2H, 2H)
    wout = wout_ref[...]    # (2H, O)   W_out^T
    bout = bout_ref[...]    # (1, O)

    lane = lax.broadcasted_iota(jnp.int32, (1, twoH), 1)
    fwd_mask = lane < H     # first H lanes carry the forward direction

    # ---- layer-0 input projection + bias, hoisted off the recurrence --------
    # "loop order": element i holds fwd xp at time i (lanes [:H]) and
    #               rev xp at time S-1-i (lanes [H:]).
    xp0 = [jnp.where(fwd_mask, x[i] * wih0, x[S - 1 - i] * wih0) + b0
           for i in range(S)]

    # ---- fused bidirectional recurrence: one dot + tanh per step ------------
    def recur(xp, whh):
        hs = [jnp.tanh(xp[0])]           # h_{-1} = 0  =>  first step needs no h@Whh
        for i in range(1, S):            # fully unrolled (S is small & static)
            h = jnp.tanh(xp[i] +
                         jnp.dot(hs[-1], whh, preferred_element_type=f32))
            hs.append(h)
        return hs                        # loop-order hidden states, (B, 2H) each

    h0 = recur(xp0, whh0)

    # ---- layer-1 input projection (both directions), off the recurrence -----
    # xp1[i][:, :H] = l0[time i]     @ W_ih_l1^T   (fwd)
    # xp1[i][:, H:] = l0[time S-1-i] @ W_ih_l1r^T  (rev)
    # expressed with the packed M1 (same loop index) / M2 (mirrored index).
    xp1 = [jnp.dot(h0[i], m1, preferred_element_type=f32)
           + jnp.dot(h0[S - 1 - i], m2, preferred_element_type=f32)
           + b1
           for i in range(S)]

    h1 = recur(xp1, whh1)

    # ---- output head: ReLU -> Linear(2H -> O) -> sigmoid, no recurrence -----
    wa = wout[:H]
    wb = wout[H:]
    outs = []
    for t in range(S):
        hf = jnp.maximum(h1[t][:, :H], 0.0)           # fwd hidden at time t
        hb = jnp.maximum(h1[S - 1 - t][:, H:], 0.0)   # rev hidden at time t
        z = (jnp.dot(hf, wa, preferred_element_type=f32)
             + jnp.dot(hb, wb, preferred_element_type=f32)
             + bout)
        outs.append(pl.reciprocal(1.0 + jnp.exp(-z), approx=True))
    out_ref[...] = jnp.stack(outs, axis=0)            # single block store


def brnn_forward(x, params):
    """x: (S, B, 1) float32.  Returns (S, B, output_size) float32."""
    S, B, _ = x.shape
    H = params["w_hh_l0"].shape[0]
    O = params["w_out"].shape[0]
    f32 = jnp.float32

    def T(w):
        return jnp.asarray(w, f32).T

    zH = jnp.zeros((H, H), f32)

    # layer 0: packed input weights / bias / block-diag W_hh
    wih0 = jnp.concatenate([T(params["w_ih_l0"]), T(params["w_ih_l0r"])], axis=1)   # (1, 2H)
    b0 = jnp.concatenate([params["b_ih_l0"] + params["b_hh_l0"],
                          params["b_ih_l0r"] + params["b_hh_l0r"]])[None, :]        # (1, 2H)
    whh0 = jnp.block([[T(params["w_hh_l0"]), zH],
                      [zH, T(params["w_hh_l0r"])]])                                 # (2H, 2H)

    # layer 1: W_ih split into halves acting on (h0_fwd | h0_rev)
    w1fa = T(params["w_ih_l1"][:, :H])    # fwd-dir weights on h0_fwd
    w1fb = T(params["w_ih_l1"][:, H:])    # fwd-dir weights on h0_rev
    w1ra = T(params["w_ih_l1r"][:, :H])   # rev-dir weights on h0_fwd
    w1rb = T(params["w_ih_l1r"][:, H:])   # rev-dir weights on h0_rev
    m1 = jnp.block([[w1fa, zH], [zH, w1rb]])    # acts on h0[loop index i]
    m2 = jnp.block([[zH, w1ra], [w1fb, zH]])    # acts on h0[loop index S-1-i]
    b1 = jnp.concatenate([params["b_ih_l1"] + params["b_hh_l1"],
                          params["b_ih_l1r"] + params["b_hh_l1r"]])[None, :]
    whh1 = jnp.block([[T(params["w_hh_l1"]), zH],
                      [zH, T(params["w_hh_l1r"])]])

    # output Linear
    wout = T(params["w_out"])                          # (2H, O)
    bout = jnp.asarray(params["b_out"], f32)[None, :]  # (1, O)

    args = [x.astype(f32), wih0, b0, whh0, m1, m2, b1, whh1, wout, bout]
    args = [jnp.asarray(a, f32) for a in args]

    vmem = pl.BlockSpec(memory_space=pltpu.MemorySpace.VMEM)
    return pl.pallas_call(
        brnn_kernel,
        out_shape=jax.ShapeDtypeStruct((S, B, O), f32),
        in_specs=[vmem] * len(args),
        out_specs=vmem,
    )(*args)


# ----------------------------- pure-JAX reference -----------------------------
def brnn_reference(x, params):
    S, B, _ = x.shape
    H = params["w_hh_l0"].shape[0]

    def run_dir(inp, w_ih, w_hh, b_ih, b_hh, reverse):
        h = jnp.zeros((B, H), jnp.float32)
        outs = [None] * S
        ts = range(S - 1, -1, -1) if reverse else range(S)
        for t in ts:
            h = jnp.tanh(inp[t] @ w_ih.T + b_ih + h @ w_hh.T + b_hh)
            outs[t] = h
        return jnp.stack(outs)

    f0 = run_dir(x, params["w_ih_l0"], params["w_hh_l0"],
                 params["b_ih_l0"], params["b_hh_l0"], False)
    r0 = run_dir(x, params["w_ih_l0r"], params["w_hh_l0r"],
                 params["b_ih_l0r"], params["b_hh_l0r"], True)
    l0 = jnp.concatenate([f0, r0], axis=-1)
    f1 = run_dir(l0, params["w_ih_l1"], params["w_hh_l1"],
                 params["b_ih_l1"], params["b_hh_l1"], False)
    r1 = run_dir(l0, params["w_ih_l1r"], params["w_hh_l1r"],
                 params["b_ih_l1r"], params["b_hh_l1r"], True)
    out = jnp.concatenate([f1, r1], axis=-1)
    out = jnp.maximum(out, 0.0) @ params["w_out"].T + params["b_out"]
    return jax.nn.sigmoid(out)


if __name__ == "__main__":
    S, B, H, O = 8, 4, 32, 4  # seq_len, batch, hidden_dim, output_size

    key = jax.random.PRNGKey(0)
    keys = jax.random.split(key, 24)
    scale = 1.0 / math.sqrt(H)

    def u(k, shape):
        return jax.random.uniform(k, shape, jnp.float32, -scale, scale)

    params = {
        # layer 0 forward / reverse (input_size = 1)
        "w_ih_l0":  u(keys[0],  (H, 1)),  "w_hh_l0":  u(keys[1],  (H, H)),
        "b_ih_l0":  u(keys[2],  (H,)),    "b_hh_l0":  u(keys[3],  (H,)),
        "w_ih_l0r": u(keys[4],  (H, 1)),  "w_hh_l0r": u(keys[5],  (H, H)),
        "b_ih_l0r": u(keys[6],  (H,)),    "b_hh_l0r": u(keys[7],  (H,)),
        # layer 1 forward / reverse (input_size = 2H)
        "w_ih_l1":  u(keys[8],  (H, 2 * H)), "w_hh_l1":  u(keys[9],  (H, H)),
        "b_ih_l1":  u(keys[10], (H,)),       "b_hh_l1":  u(keys[11], (H,)),
        "w_ih_l1r": u(keys[12], (H, 2 * H)), "w_hh_l1r": u(keys[13], (H, H)),
        "b_ih_l1r": u(keys[14], (H,)),       "b_hh_l1r": u(keys[15], (H,)),
        # hidden2out Linear(2H -> O)
        "w_out": jax.random.uniform(keys[16], (O, 2 * H), jnp.float32,
                                    -1.0 / math.sqrt(2 * H), 1.0 / math.sqrt(2 * H)),
        "b_out": jax.random.uniform(keys[17], (O,), jnp.float32,
                                    -1.0 / math.sqrt(2 * H), 1.0 / math.sqrt(2 * H)),
    }

    x = jax.random.normal(keys[18], (S, B, 1), jnp.float32)

    out = jax.block_until_ready(brnn_forward(x, params))
    ref = jax.block_until_ready(brnn_reference(x, params))

    assert out.shape == (S, B, O), out.shape
    np.testing.assert_allclose(np.asarray(out), np.asarray(ref),
                               rtol=2e-3, atol=2e-3)
    print("KERNEL_OK")
</pallas_src>

<mosaic_0001>
module attributes {stable_mosaic.version = 11 : i64} {
  func.func @brnn_kernel(%arg0: memref<8x4x1xf32, #tpu.memory_space<vmem>>, %arg1: memref<1x64xf32, #tpu.memory_space<vmem>>, %arg2: memref<1x64xf32, #tpu.memory_space<vmem>>, %arg3: memref<64x64xf32, #tpu.memory_space<vmem>>, %arg4: memref<64x64xf32, #tpu.memory_space<vmem>>, %arg5: memref<64x64xf32, #tpu.memory_space<vmem>>, %arg6: memref<1x64xf32, #tpu.memory_space<vmem>>, %arg7: memref<64x64xf32, #tpu.memory_space<vmem>>, %arg8: memref<64x4xf32, #tpu.memory_space<vmem>>, %arg9: memref<1x4xf32, #tpu.memory_space<vmem>>, %arg10: memref<8x4x4xf32, #tpu.memory_space<vmem>>) attributes {dimension_semantics = [], scalar_prefetch = 0 : i64, scratch_operands = 0 : i64, tpu.core_type = #tpu.core_type<tc>} {
    %c0 = arith.constant 0 : index
    %c0_0 = arith.constant 0 : index
    %c0_1 = arith.constant 0 : index
    %0 = vector.load %arg0[%c0, %c0_0, %c0_1] : memref<8x4x1xf32, #tpu.memory_space<vmem>>, vector<8x4x1xf32>
    %c0_2 = arith.constant 0 : index
    %c0_3 = arith.constant 0 : index
    %1 = vector.load %arg1[%c0_2, %c0_3] : memref<1x64xf32, #tpu.memory_space<vmem>>, vector<1x64xf32>
    %c0_4 = arith.constant 0 : index
    %c0_5 = arith.constant 0 : index
    %2 = vector.load %arg2[%c0_4, %c0_5] : memref<1x64xf32, #tpu.memory_space<vmem>>, vector<1x64xf32>
    %c0_6 = arith.constant 0 : index
    %c0_7 = arith.constant 0 : index
    %3 = vector.load %arg3[%c0_6, %c0_7] : memref<64x64xf32, #tpu.memory_space<vmem>>, vector<64x64xf32>
    %c0_8 = arith.constant 0 : index
    %c0_9 = arith.constant 0 : index
    %4 = vector.load %arg4[%c0_8, %c0_9] : memref<64x64xf32, #tpu.memory_space<vmem>>, vector<64x64xf32>
    %c0_10 = arith.constant 0 : index
    %c0_11 = arith.constant 0 : index
    %5 = vector.load %arg5[%c0_10, %c0_11] : memref<64x64xf32, #tpu.memory_space<vmem>>, vector<64x64xf32>
    %c0_12 = arith.constant 0 : index
    %c0_13 = arith.constant 0 : index
    %6 = vector.load %arg6[%c0_12, %c0_13] : memref<1x64xf32, #tpu.memory_space<vmem>>, vector<1x64xf32>
    %c0_14 = arith.constant 0 : index
    %c0_15 = arith.constant 0 : index
    %7 = vector.load %arg7[%c0_14, %c0_15] : memref<64x64xf32, #tpu.memory_space<vmem>>, vector<64x64xf32>
    %c0_16 = arith.constant 0 : index
    %c0_17 = arith.constant 0 : index
    %8 = vector.load %arg8[%c0_16, %c0_17] : memref<64x4xf32, #tpu.memory_space<vmem>>, vector<64x4xf32>
    %c0_18 = arith.constant 0 : index
    %c0_19 = arith.constant 0 : index
    %9 = vector.load %arg9[%c0_18, %c0_19] : memref<1x4xf32, #tpu.memory_space<vmem>>, vector<1x4xf32>
    %10 = tpu.iota {dimensions = array<i32: 1>} : vector<1x64xi32>
    %c32_i32 = arith.constant 32 : i32
    %11 = vector.broadcast %c32_i32 : i32 to vector<1x64xi32>
    %12 = arith.cmpi slt, %10, %11 : vector<1x64xi32>
    %13 = vector.extract_strided_slice %0 {offsets = [0, 0, 0], sizes = [1, 4, 1], strides = [1, 1, 1]} : vector<8x4x1xf32> to vector<1x4x1xf32>
    %14 = vector.shape_cast %13 : vector<1x4x1xf32> to vector<4x1xf32>
    %15 = vector.broadcast %14 : vector<4x1xf32> to vector<4x64xf32>
    %16 = vector.broadcast %1 : vector<1x64xf32> to vector<4x64xf32>
    %17 = arith.mulf %15, %16 : vector<4x64xf32>
    %18 = vector.extract_strided_slice %0 {offsets = [7, 0, 0], sizes = [1, 4, 1], strides = [1, 1, 1]} : vector<8x4x1xf32> to vector<1x4x1xf32>
    %19 = vector.shape_cast %18 : vector<1x4x1xf32> to vector<4x1xf32>
    %20 = vector.broadcast %19 : vector<4x1xf32> to vector<4x64xf32>
    %21 = vector.broadcast %1 : vector<1x64xf32> to vector<4x64xf32>
    %22 = arith.mulf %20, %21 : vector<4x64xf32>
    %23 = vector.shape_cast %12 : vector<1x64xi1> to vector<1x64xi1>
    %24 = vector.broadcast %23 : vector<1x64xi1> to vector<4x64xi1>
    %25 = arith.select %24, %17, %22 : vector<4x64xi1>, vector<4x64xf32>
    %26 = vector.broadcast %2 : vector<1x64xf32> to vector<4x64xf32>
    %27 = arith.addf %25, %26 : vector<4x64xf32>
    %28 = vector.extract_strided_slice %0 {offsets = [1, 0, 0], sizes = [1, 4, 1], strides = [1, 1, 1]} : vector<8x4x1xf32> to vector<1x4x1xf32>
    %29 = vector.shape_cast %28 : vector<1x4x1xf32> to vector<4x1xf32>
    %30 = vector.broadcast %29 : vector<4x1xf32> to vector<4x64xf32>
    %31 = vector.broadcast %1 : vector<1x64xf32> to vector<4x64xf32>
    %32 = arith.mulf %30, %31 : vector<4x64xf32>
    %33 = vector.extract_strided_slice %0 {offsets = [6, 0, 0], sizes = [1, 4, 1], strides = [1, 1, 1]} : vector<8x4x1xf32> to vector<1x4x1xf32>
    %34 = vector.shape_cast %33 : vector<1x4x1xf32> to vector<4x1xf32>
    %35 = vector.broadcast %34 : vector<4x1xf32> to vector<4x64xf32>
    %36 = vector.broadcast %1 : vector<1x64xf32> to vector<4x64xf32>
    %37 = arith.mulf %35, %36 : vector<4x64xf32>
    %38 = vector.shape_cast %12 : vector<1x64xi1> to vector<1x64xi1>
    %39 = vector.broadcast %38 : vector<1x64xi1> to vector<4x64xi1>
    %40 = arith.select %39, %32, %37 : vector<4x64xi1>, vector<4x64xf32>
    %41 = vector.broadcast %2 : vector<1x64xf32> to vector<4x64xf32>
    %42 = arith.addf %40, %41 : vector<4x64xf32>
    %43 = vector.extract_strided_slice %0 {offsets = [2, 0, 0], sizes = [1, 4, 1], strides = [1, 1, 1]} : vector<8x4x1xf32> to vector<1x4x1xf32>
    %44 = vector.shape_cast %43 : vector<1x4x1xf32> to vector<4x1xf32>
    %45 = vector.broadcast %44 : vector<4x1xf32> to vector<4x64xf32>
    %46 = vector.broadcast %1 : vector<1x64xf32> to vector<4x64xf32>
    %47 = arith.mulf %45, %46 : vector<4x64xf32>
    %48 = vector.extract_strided_slice %0 {offsets = [5, 0, 0], sizes = [1, 4, 1], strides = [1, 1, 1]} : vector<8x4x1xf32> to vector<1x4x1xf32>
    %49 = vector.shape_cast %48 : vector<1x4x1xf32> to vector<4x1xf32>
    %50 = vector.broadcast %49 : vector<4x1xf32> to vector<4x64xf32>
    %51 = vector.broadcast %1 : vector<1x64xf32> to vector<4x64xf32>
    %52 = arith.mulf %50, %51 : vector<4x64xf32>
    %53 = vector.shape_cast %12 : vector<1x64xi1> to vector<1x64xi1>
    %54 = vector.broadcast %53 : vector<1x64xi1> to vector<4x64xi1>
    %55 = arith.select %54, %47, %52 : vector<4x64xi1>, vector<4x64xf32>
    %56 = vector.broadcast %2 : vector<1x64xf32> to vector<4x64xf32>
    %57 = arith.addf %55, %56 : vector<4x64xf32>
    %58 = vector.extract_strided_slice %0 {offsets = [3, 0, 0], sizes = [1, 4, 1], strides = [1, 1, 1]} : vector<8x4x1xf32> to vector<1x4x1xf32>
    %59 = vector.shape_cast %58 : vector<1x4x1xf32> to vector<4x1xf32>
    %60 = vector.broadcast %59 : vector<4x1xf32> to vector<4x64xf32>
    %61 = vector.broadcast %1 : vector<1x64xf32> to vector<4x64xf32>
    %62 = arith.mulf %60, %61 : vector<4x64xf32>
    %63 = vector.extract_strided_slice %0 {offsets = [4, 0, 0], sizes = [1, 4, 1], strides = [1, 1, 1]} : vector<8x4x1xf32> to vector<1x4x1xf32>
    %64 = vector.shape_cast %63 : vector<1x4x1xf32> to vector<4x1xf32>
    %65 = vector.broadcast %64 : vector<4x1xf32> to vector<4x64xf32>
    %66 = vector.broadcast %1 : vector<1x64xf32> to vector<4x64xf32>
    %67 = arith.mulf %65, %66 : vector<4x64xf32>
    %68 = vector.shape_cast %12 : vector<1x64xi1> to vector<1x64xi1>
    %69 = vector.broadcast %68 : vector<1x64xi1> to vector<4x64xi1>
    %70 = arith.select %69, %62, %67 : vector<4x64xi1>, vector<4x64xf32>
    %71 = vector.broadcast %2 : vector<1x64xf32> to vector<4x64xf32>
    %72 = arith.addf %70, %71 : vector<4x64xf32>
    %73 = vector.extract_strided_slice %0 {offsets = [4, 0, 0], sizes = [1, 4, 1], strides = [1, 1, 1]} : vector<8x4x1xf32> to vector<1x4x1xf32>
    %74 = vector.shape_cast %73 : vector<1x4x1xf32> to vector<4x1xf32>
    %75 = vector.broadcast %74 : vector<4x1xf32> to vector<4x64xf32>
    %76 = vector.broadcast %1 : vector<1x64xf32> to vector<4x64xf32>
    %77 = arith.mulf %75, %76 : vector<4x64xf32>
    %78 = vector.extract_strided_slice %0 {offsets = [3, 0, 0], sizes = [1, 4, 1], strides = [1, 1, 1]} : vector<8x4x1xf32> to vector<1x4x1xf32>
    %79 = vector.shape_cast %78 : vector<1x4x1xf32> to vector<4x1xf32>
    %80 = vector.broadcast %79 : vector<4x1xf32> to vector<4x64xf32>
    %81 = vector.broadcast %1 : vector<1x64xf32> to vector<4x64xf32>
    %82 = arith.mulf %80, %81 : vector<4x64xf32>
    %83 = vector.shape_cast %12 : vector<1x64xi1> to vector<1x64xi1>
    %84 = vector.broadcast %83 : vector<1x64xi1> to vector<4x64xi1>
    %85 = arith.select %84, %77, %82 : vector<4x64xi1>, vector<4x64xf32>
    %86 = vector.broadcast %2 : vector<1x64xf32> to vector<4x64xf32>
    %87 = arith.addf %85, %86 : vector<4x64xf32>
    %88 = vector.extract_strided_slice %0 {offsets = [5, 0, 0], sizes = [1, 4, 1], strides = [1, 1, 1]} : vector<8x4x1xf32> to vector<1x4x1xf32>
    %89 = vector.shape_cast %88 : vector<1x4x1xf32> to vector<4x1xf32>
    %90 = vector.broadcast %89 : vector<4x1xf32> to vector<4x64xf32>
    %91 = vector.broadcast %1 : vector<1x64xf32> to vector<4x64xf32>
    %92 = arith.mulf %90, %91 : vector<4x64xf32>
    %93 = vector.extract_strided_slice %0 {offsets = [2, 0, 0], sizes = [1, 4, 1], strides = [1, 1, 1]} : vector<8x4x1xf32> to vector<1x4x1xf32>
    %94 = vector.shape_cast %93 : vector<1x4x1xf32> to vector<4x1xf32>
    %95 = vector.broadcast %94 : vector<4x1xf32> to vector<4x64xf32>
    %96 = vector.broadcast %1 : vector<1x64xf32> to vector<4x64xf32>
    %97 = arith.mulf %95, %96 : vector<4x64xf32>
    %98 = vector.shape_cast %12 : vector<1x64xi1> to vector<1x64xi1>
    %99 = vector.broadcast %98 : vector<1x64xi1> to vector<4x64xi1>
    %100 = arith.select %99, %92, %97 : vector<4x64xi1>, vector<4x64xf32>
    %101 = vector.broadcast %2 : vector<1x64xf32> to vector<4x64xf32>
    %102 = arith.addf %100, %101 : vector<4x64xf32>
    %103 = vector.extract_strided_slice %0 {offsets = [6, 0, 0], sizes = [1, 4, 1], strides = [1, 1, 1]} : vector<8x4x1xf32> to vector<1x4x1xf32>
    %104 = vector.shape_cast %103 : vector<1x4x1xf32> to vector<4x1xf32>
    %105 = vector.broadcast %104 : vector<4x1xf32> to vector<4x64xf32>
    %106 = vector.broadcast %1 : vector<1x64xf32> to vector<4x64xf32>
    %107 = arith.mulf %105, %106 : vector<4x64xf32>
    %108 = vector.extract_strided_slice %0 {offsets = [1, 0, 0], sizes = [1, 4, 1], strides = [1, 1, 1]} : vector<8x4x1xf32> to vector<1x4x1xf32>
    %109 = vector.shape_cast %108 : vector<1x4x1xf32> to vector<4x1xf32>
    %110 = vector.broadcast %109 : vector<4x1xf32> to vector<4x64xf32>
    %111 = vector.broadcast %1 : vector<1x64xf32> to vector<4x64xf32>
    %112 = arith.mulf %110, %111 : vector<4x64xf32>
    %113 = vector.shape_cast %12 : vector<1x64xi1> to vector<1x64xi1>
    %114 = vector.broadcast %113 : vector<1x64xi1> to vector<4x64xi1>
    %115 = arith.select %114, %107, %112 : vector<4x64xi1>, vector<4x64xf32>
    %116 = vector.broadcast %2 : vector<1x64xf32> to vector<4x64xf32>
    %117 = arith.addf %115, %116 : vector<4x64xf32>
    %118 = vector.extract_strided_slice %0 {offsets = [7, 0, 0], sizes = [1, 4, 1], strides = [1, 1, 1]} : vector<8x4x1xf32> to vector<1x4x1xf32>
    %119 = vector.shape_cast %118 : vector<1x4x1xf32> to vector<4x1xf32>
    %120 = vector.broadcast %119 : vector<4x1xf32> to vector<4x64xf32>
    %121 = vector.broadcast %1 : vector<1x64xf32> to vector<4x64xf32>
    %122 = arith.mulf %120, %121 : vector<4x64xf32>
    %123 = vector.extract_strided_slice %0 {offsets = [0, 0, 0], sizes = [1, 4, 1], strides = [1, 1, 1]} : vector<8x4x1xf32> to vector<1x4x1xf32>
    %124 = vector.shape_cast %123 : vector<1x4x1xf32> to vector<4x1xf32>
    %125 = vector.broadcast %124 : vector<4x1xf32> to vector<4x64xf32>
    %126 = vector.broadcast %1 : vector<1x64xf32> to vector<4x64xf32>
    %127 = arith.mulf %125, %126 : vector<4x64xf32>
    %128 = vector.shape_cast %12 : vector<1x64xi1> to vector<1x64xi1>
    %129 = vector.broadcast %128 : vector<1x64xi1> to vector<4x64xi1>
    %130 = arith.select %129, %122, %127 : vector<4x64xi1>, vector<4x64xf32>
    %131 = vector.broadcast %2 : vector<1x64xf32> to vector<4x64xf32>
    %132 = arith.addf %130, %131 : vector<4x64xf32>
    %133 = math.tanh %27 : vector<4x64xf32>
    %cst = arith.constant dense<0.000000e+00> : vector<4x64xf32>
    %134 = tpu.matmul %133, %3, %cst {dimension_numbers = #tpu.dot_dimension_numbers<[1], [0], [0], [1], [0, 0, 1, 1], [], []>} : vector<4x64xf32>, vector<64x64xf32>, vector<4x64xf32> -> vector<4x64xf32>
    %135 = arith.addf %42, %134 : vector<4x64xf32>
    %136 = math.tanh %135 : vector<4x64xf32>
    %cst_20 = arith.constant dense<0.000000e+00> : vector<4x64xf32>
    %137 = tpu.matmul %136, %3, %cst_20 {dimension_numbers = #tpu.dot_dimension_numbers<[1], [0], [0], [1], [0, 0, 1, 1], [], []>} : vector<4x64xf32>, vector<64x64xf32>, vector<4x64xf32> -> vector<4x64xf32>
    %138 = arith.addf %57, %137 : vector<4x64xf32>
    %139 = math.tanh %138 : vector<4x64xf32>
    %cst_21 = arith.constant dense<0.000000e+00> : vector<4x64xf32>
    %140 = tpu.matmul %139, %3, %cst_21 {dimension_numbers = #tpu.dot_dimension_numbers<[1], [0], [0], [1], [0, 0, 1, 1], [], []>} : vector<4x64xf32>, vector<64x64xf32>, vector<4x64xf32> -> vector<4x64xf32>
    %141 = arith.addf %72, %140 : vector<4x64xf32>
    %142 = math.tanh %141 : vector<4x64xf32>
    %cst_22 = arith.constant dense<0.000000e+00> : vector<4x64xf32>
    %143 = tpu.matmul %142, %3, %cst_22 {dimension_numbers = #tpu.dot_dimension_numbers<[1], [0], [0], [1], [0, 0, 1, 1], [], []>} : vector<4x64xf32>, vector<64x64xf32>, vector<4x64xf32> -> vector<4x64xf32>
    %144 = arith.addf %87, %143 : vector<4x64xf32>
    %145 = math.tanh %144 : vector<4x64xf32>
    %cst_23 = arith.constant dense<0.000000e+00> : vector<4x64xf32>
    %146 = tpu.matmul %145, %3, %cst_23 {dimension_numbers = #tpu.dot_dimension_numbers<[1], [0], [0], [1], [0, 0, 1, 1], [], []>} : vector<4x64xf32>, vector<64x64xf32>, vector<4x64xf32> -> vector<4x64xf32>
    %147 = arith.addf %102, %146 : vector<4x64xf32>
    %148 = math.tanh %147 : vector<4x64xf32>
    %cst_24 = arith.constant dense<0.000000e+00> : vector<4x64xf32>
    %149 = tpu.matmul %148, %3, %cst_24 {dimension_numbers = #tpu.dot_dimension_numbers<[1], [0], [0], [1], [0, 0, 1, 1], [], []>} : vector<4x64xf32>, vector<64x64xf32>, vector<4x64xf32> -> vector<4x64xf32>
    %150 = arith.addf %117, %149 : vector<4x64xf32>
    %151 = math.tanh %150 : vector<4x64xf32>
    %cst_25 = arith.constant dense<0.000000e+00> : vector<4x64xf32>
    %152 = tpu.matmul %151, %3, %cst_25 {dimension_numbers = #tpu.dot_dimension_numbers<[1], [0], [0], [1], [0, 0, 1, 1], [], []>} : vector<4x64xf32>, vector<64x64xf32>, vector<4x64xf32> -> vector<4x64xf32>
    %153 = arith.addf %132, %152 : vector<4x64xf32>
    %154 = math.tanh %153 : vector<4x64xf32>
    %cst_26 = arith.constant dense<0.000000e+00> : vector<4x64xf32>
    %155 = tpu.matmul %133, %4, %cst_26 {dimension_numbers = #tpu.dot_dimension_numbers<[1], [0], [0], [1], [0, 0, 1, 1], [], []>} : vector<4x64xf32>, vector<64x64xf32>, vector<4x64xf32> -> vector<4x64xf32>
    %cst_27 = arith.constant dense<0.000000e+00> : vector<4x64xf32>
    %156 = tpu.matmul %154, %5, %cst_27 {dimension_numbers = #tpu.dot_dimension_numbers<[1], [0], [0], [1], [0, 0, 1, 1], [], []>} : vector<4x64xf32>, vector<64x64xf32>, vector<4x64xf32> -> vector<4x64xf32>
    %157 = arith.addf %155, %156 : vector<4x64xf32>
    %158 = vector.broadcast %6 : vector<1x64xf32> to vector<4x64xf32>
    %159 = arith.addf %157, %158 : vector<4x64xf32>
    %cst_28 = arith.constant dense<0.000000e+00> : vector<4x64xf32>
    %160 = tpu.matmul %136, %4, %cst_28 {dimension_numbers = #tpu.dot_dimension_numbers<[1], [0], [0], [1], [0, 0, 1, 1], [], []>} : vector<4x64xf32>, vector<64x64xf32>, vector<4x64xf32> -> vector<4x64xf32>
    %cst_29 = arith.constant dense<0.000000e+00> : vector<4x64xf32>
    %161 = tpu.matmul %151, %5, %cst_29 {dimension_numbers = #tpu.dot_dimension_numbers<[1], [0], [0], [1], [0, 0, 1, 1], [], []>} : vector<4x64xf32>, vector<64x64xf32>, vector<4x64xf32> -> vector<4x64xf32>
    %162 = arith.addf %160, %161 : vector<4x64xf32>
    %163 = vector.broadcast %6 : vector<1x64xf32> to vector<4x64xf32>
    %164 = arith.addf %162, %163 : vector<4x64xf32>
    %cst_30 = arith.constant dense<0.000000e+00> : vector<4x64xf32>
    %165 = tpu.matmul %139, %4, %cst_30 {dimension_numbers = #tpu.dot_dimension_numbers<[1], [0], [0], [1], [0, 0, 1, 1], [], []>} : vector<4x64xf32>, vector<64x64xf32>, vector<4x64xf32> -> vector<4x64xf32>
    %cst_31 = arith.constant dense<0.000000e+00> : vector<4x64xf32>
    %166 = tpu.matmul %148, %5, %cst_31 {dimension_numbers = #tpu.dot_dimension_numbers<[1], [0], [0], [1], [0, 0, 1, 1], [], []>} : vector<4x64xf32>, vector<64x64xf32>, vector<4x64xf32> -> vector<4x64xf32>
    %167 = arith.addf %165, %166 : vector<4x64xf32>
    %168 = vector.broadcast %6 : vector<1x64xf32> to vector<4x64xf32>
    %169 = arith.addf %167, %168 : vector<4x64xf32>
    %cst_32 = arith.constant dense<0.000000e+00> : vector<4x64xf32>
    %170 = tpu.matmul %142, %4, %cst_32 {dimension_numbers = #tpu.dot_dimension_numbers<[1], [0], [0], [1], [0, 0, 1, 1], [], []>} : vector<4x64xf32>, vector<64x64xf32>, vector<4x64xf32> -> vector<4x64xf32>
    %cst_33 = arith.constant dense<0.000000e+00> : vector<4x64xf32>
    %171 = tpu.matmul %145, %5, %cst_33 {dimension_numbers = #tpu.dot_dimension_numbers<[1], [0], [0], [1], [0, 0, 1, 1], [], []>} : vector<4x64xf32>, vector<64x64xf32>, vector<4x64xf32> -> vector<4x64xf32>
    %172 = arith.addf %170, %171 : vector<4x64xf32>
    %173 = vector.broadcast %6 : vector<1x64xf32> to vector<4x64xf32>
    %174 = arith.addf %172, %173 : vector<4x64xf32>
    %cst_34 = arith.constant dense<0.000000e+00> : vector<4x64xf32>
    %175 = tpu.matmul %145, %4, %cst_34 {dimension_numbers = #tpu.dot_dimension_numbers<[1], [0], [0], [1], [0, 0, 1, 1], [], []>} : vector<4x64xf32>, vector<64x64xf32>, vector<4x64xf32> -> vector<4x64xf32>
    %cst_35 = arith.constant dense<0.000000e+00> : vector<4x64xf32>
    %176 = tpu.matmul %142, %5, %cst_35 {dimension_numbers = #tpu.dot_dimension_numbers<[1], [0], [0], [1], [0, 0, 1, 1], [], []>} : vector<4x64xf32>, vector<64x64xf32>, vector<4x64xf32> -> vector<4x64xf32>
    %177 = arith.addf %175, %176 : vector<4x64xf32>
    %178 = vector.broadcast %6 : vector<1x64xf32> to vector<4x64xf32>
    %179 = arith.addf %177, %178 : vector<4x64xf32>
    %cst_36 = arith.constant dense<0.000000e+00> : vector<4x64xf32>
    %180 = tpu.matmul %148, %4, %cst_36 {dimension_numbers = #tpu.dot_dimension_numbers<[1], [0], [0], [1], [0, 0, 1, 1], [], []>} : vector<4x64xf32>, vector<64x64xf32>, vector<4x64xf32> -> vector<4x64xf32>
    %cst_37 = arith.constant dense<0.000000e+00> : vector<4x64xf32>
    %181 = tpu.matmul %139, %5, %cst_37 {dimension_numbers = #tpu.dot_dimension_numbers<[1], [0], [0], [1], [0, 0, 1, 1], [], []>} : vector<4x64xf32>, vector<64x64xf32>, vector<4x64xf32> -> vector<4x64xf32>
    %182 = arith.addf %180, %181 : vector<4x64xf32>
    %183 = vector.broadcast %6 : vector<1x64xf32> to vector<4x64xf32>
    %184 = arith.addf %182, %183 : vector<4x64xf32>
    %cst_38 = arith.constant dense<0.000000e+00> : vector<4x64xf32>
    %185 = tpu.matmul %151, %4, %cst_38 {dimension_numbers = #tpu.dot_dimension_numbers<[1], [0], [0], [1], [0, 0, 1, 1], [], []>} : vector<4x64xf32>, vector<64x64xf32>, vector<4x64xf32> -> vector<4x64xf32>
    %cst_39 = arith.constant dense<0.000000e+00> : vector<4x64xf32>
    %186 = tpu.matmul %136, %5, %cst_39 {dimension_numbers = #tpu.dot_dimension_numbers<[1], [0], [0], [1], [0, 0, 1, 1], [], []>} : vector<4x64xf32>, vector<64x64xf32>, vector<4x64xf32> -> vector<4x64xf32>
    %187 = arith.addf %185, %186 : vector<4x64xf32>
    %188 = vector.broadcast %6 : vector<1x64xf32> to vector<4x64xf32>
    %189 = arith.addf %187, %188 : vector<4x64xf32>
    %cst_40 = arith.constant dense<0.000000e+00> : vector<4x64xf32>
    %190 = tpu.matmul %154, %4, %cst_40 {dimension_numbers = #tpu.dot_dimension_numbers<[1], [0], [0], [1], [0, 0, 1, 1], [], []>} : vector<4x64xf32>, vector<64x64xf32>, vector<4x64xf32> -> vector<4x64xf32>
    %cst_41 = arith.constant dense<0.000000e+00> : vector<4x64xf32>
    %191 = tpu.matmul %133, %5, %cst_41 {dimension_numbers = #tpu.dot_dimension_numbers<[1], [0], [0], [1], [0, 0, 1, 1], [], []>} : vector<4x64xf32>, vector<64x64xf32>, vector<4x64xf32> -> vector<4x64xf32>
    %192 = arith.addf %190, %191 : vector<4x64xf32>
    %193 = vector.broadcast %6 : vector<1x64xf32> to vector<4x64xf32>
    %194 = arith.addf %192, %193 : vector<4x64xf32>
    %195 = math.tanh %159 : vector<4x64xf32>
    %cst_42 = arith.constant dense<0.000000e+00> : vector<4x64xf32>
    %196 = tpu.matmul %195, %7, %cst_42 {dimension_numbers = #tpu.dot_dimension_numbers<[1], [0], [0], [1], [0, 0, 1, 1], [], []>} : vector<4x64xf32>, vector<64x64xf32>, vector<4x64xf32> -> vector<4x64xf32>
    %197 = arith.addf %164, %196 : vector<4x64xf32>
    %198 = math.tanh %197 : vector<4x64xf32>
    %cst_43 = arith.constant dense<0.000000e+00> : vector<4x64xf32>
    %199 = tpu.matmul %198, %7, %cst_43 {dimension_numbers = #tpu.dot_dimension_numbers<[1], [0], [0], [1], [0, 0, 1, 1], [], []>} : vector<4x64xf32>, vector<64x64xf32>, vector<4x64xf32> -> vector<4x64xf32>
    %200 = arith.addf %169, %199 : vector<4x64xf32>
    %201 = math.tanh %200 : vector<4x64xf32>
    %cst_44 = arith.constant dense<0.000000e+00> : vector<4x64xf32>
    %202 = tpu.matmul %201, %7, %cst_44 {dimension_numbers = #tpu.dot_dimension_numbers<[1], [0], [0], [1], [0, 0, 1, 1], [], []>} : vector<4x64xf32>, vector<64x64xf32>, vector<4x64xf32> -> vector<4x64xf32>
    %203 = arith.addf %174, %202 : vector<4x64xf32>
    %204 = math.tanh %203 : vector<4x64xf32>
    %cst_45 = arith.constant dense<0.000000e+00> : vector<4x64xf32>
    %205 = tpu.matmul %204, %7, %cst_45 {dimension_numbers = #tpu.dot_dimension_numbers<[1], [0], [0], [1], [0, 0, 1, 1], [], []>} : vector<4x64xf32>, vector<64x64xf32>, vector<4x64xf32> -> vector<4x64xf32>
    %206 = arith.addf %179, %205 : vector<4x64xf32>
    %207 = math.tanh %206 : vector<4x64xf32>
    %cst_46 = arith.constant dense<0.000000e+00> : vector<4x64xf32>
    %208 = tpu.matmul %207, %7, %cst_46 {dimension_numbers = #tpu.dot_dimension_numbers<[1], [0], [0], [1], [0, 0, 1, 1], [], []>} : vector<4x64xf32>, vector<64x64xf32>, vector<4x64xf32> -> vector<4x64xf32>
    %209 = arith.addf %184, %208 : vector<4x64xf32>
    %210 = math.tanh %209 : vector<4x64xf32>
    %cst_47 = arith.constant dense<0.000000e+00> : vector<4x64xf32>
    %211 = tpu.matmul %210, %7, %cst_47 {dimension_numbers = #tpu.dot_dimension_numbers<[1], [0], [0], [1], [0, 0, 1, 1], [], []>} : vector<4x64xf32>, vector<64x64xf32>, vector<4x64xf32> -> vector<4x64xf32>
    %212 = arith.addf %189, %211 : vector<4x64xf32>
    %213 = math.tanh %212 : vector<4x64xf32>
    %cst_48 = arith.constant dense<0.000000e+00> : vector<4x64xf32>
    %214 = tpu.matmul %213, %7, %cst_48 {dimension_numbers = #tpu.dot_dimension_numbers<[1], [0], [0], [1], [0, 0, 1, 1], [], []>} : vector<4x64xf32>, vector<64x64xf32>, vector<4x64xf32> -> vector<4x64xf32>
    %215 = arith.addf %194, %214 : vector<4x64xf32>
    %216 = math.tanh %215 : vector<4x64xf32>
    %217 = vector.extract_strided_slice %8 {offsets = [0, 0], sizes = [32, 4], strides = [1, 1]} : vector<64x4xf32> to vector<32x4xf32>
    %218 = vector.extract_strided_slice %8 {offsets = [32, 0], sizes = [32, 4], strides = [1, 1]} : vector<64x4xf32> to vector<32x4xf32>
    %219 = vector.extract_strided_slice %195 {offsets = [0, 0], sizes = [4, 32], strides = [1, 1]} : vector<4x64xf32> to vector<4x32xf32>
    %cst_49 = arith.constant 0.000000e+00 : f32
    %220 = vector.broadcast %cst_49 : f32 to vector<4x32xf32>
    %221 = arith.maximumf %219, %220 : vector<4x32xf32>
    %222 = vector.extract_strided_slice %216 {offsets = [0, 32], sizes = [4, 32], strides = [1, 1]} : vector<4x64xf32> to vector<4x32xf32>
    %cst_50 = arith.constant 0.000000e+00 : f32
    %223 = vector.broadcast %cst_50 : f32 to vector<4x32xf32>
    %224 = arith.maximumf %222, %223 : vector<4x32xf32>
    %cst_51 = arith.constant dense<0.000000e+00> : vector<4x4xf32>
    %225 = tpu.matmul %221, %217, %cst_51 {dimension_numbers = #tpu.dot_dimension_numbers<[1], [0], [0], [1], [0, 0, 1, 1], [], []>} : vector<4x32xf32>, vector<32x4xf32>, vector<4x4xf32> -> vector<4x4xf32>
    %cst_52 = arith.constant dense<0.000000e+00> : vector<4x4xf32>
    %226 = tpu.matmul %224, %218, %cst_52 {dimension_numbers = #tpu.dot_dimension_numbers<[1], [0], [0], [1], [0, 0, 1, 1], [], []>} : vector<4x32xf32>, vector<32x4xf32>, vector<4x4xf32> -> vector<4x4xf32>
    %227 = arith.addf %225, %226 : vector<4x4xf32>
    %228 = vector.broadcast %9 : vector<1x4xf32> to vector<4x4xf32>
    %229 = arith.addf %227, %228 : vector<4x4xf32>
    %cst_53 = arith.constant 0.000000e+00 : f32
    %230 = vector.broadcast %cst_53 : f32 to vector<4x4xf32>
    %231 = arith.subf %230, %229 : vector<4x4xf32>
    %232 = math.exp %231 : vector<4x4xf32>
    %cst_54 = arith.constant 1.000000e+00 : f32
    %233 = vector.broadcast %cst_54 : f32 to vector<4x4xf32>
    %234 = arith.addf %233, %232 : vector<4x4xf32>
    %235 = tpu.reciprocal %234 {approx = true} : vector<4x4xf32> -> vector<4x4xf32>
    %236 = vector.extract_strided_slice %198 {offsets = [0, 0], sizes = [4, 32], strides = [1, 1]} : vector<4x64xf32> to vector<4x32xf32>
    %cst_55 = arith.constant 0.000000e+00 : f32
    %237 = vector.broadcast %cst_55 : f32 to vector<4x32xf32>
    %238 = arith.maximumf %236, %237 : vector<4x32xf32>
    %239 = vector.extract_strided_slice %213 {offsets = [0, 32], sizes = [4, 32], strides = [1, 1]} : vector<4x64xf32> to vector<4x32xf32>
    %cst_56 = arith.constant 0.000000e+00 : f32
    %240 = vector.broadcast %cst_56 : f32 to vector<4x32xf32>
    %241 = arith.maximumf %239, %240 : vector<4x32xf32>
    %cst_57 = arith.constant dense<0.000000e+00> : vector<4x4xf32>
    %242 = tpu.matmul %238, %217, %cst_57 {dimension_numbers = #tpu.dot_dimension_numbers<[1], [0], [0], [1], [0, 0, 1, 1], [], []>} : vector<4x32xf32>, vector<32x4xf32>, vector<4x4xf32> -> vector<4x4xf32>
    %cst_58 = arith.constant dense<0.000000e+00> : vector<4x4xf32>
    %243 = tpu.matmul %241, %218, %cst_58 {dimension_numbers = #tpu.dot_dimension_numbers<[1], [0], [0], [1], [0, 0, 1, 1], [], []>} : vector<4x32xf32>, vector<32x4xf32>, vector<4x4xf32> -> vector<4x4xf32>
    %244 = arith.addf %242, %243 : vector<4x4xf32>
    %245 = vector.broadcast %9 : vector<1x4xf32> to vector<4x4xf32>
    %246 = arith.addf %244, %245 : vector<4x4xf32>
    %cst_59 = arith.constant 0.000000e+00 : f32
    %247 = vector.broadcast %cst_59 : f32 to vector<4x4xf32>
    %248 = arith.subf %247, %246 : vector<4x4xf32>
    %249 = math.exp %248 : vector<4x4xf32>
    %cst_60 = arith.constant 1.000000e+00 : f32
    %250 = vector.broadcast %cst_60 : f32 to vector<4x4xf32>
    %251 = arith.addf %250, %249 : vector<4x4xf32>
    %252 = tpu.reciprocal %251 {approx = true} : vector<4x4xf32> -> vector<4x4xf32>
    %253 = vector.extract_strided_slice %201 {offsets = [0, 0], sizes = [4, 32], strides = [1, 1]} : vector<4x64xf32> to vector<4x32xf32>
    %cst_61 = arith.constant 0.000000e+00 : f32
    %254 = vector.broadcast %cst_61 : f32 to vector<4x32xf32>
    %255 = arith.maximumf %253, %254 : vector<4x32xf32>
    %256 = vector.extract_strided_slice %210 {offsets = [0, 32], sizes = [4, 32], strides = [1, 1]} : vector<4x64xf32> to vector<4x32xf32>
    %cst_62 = arith.constant 0.000000e+00 : f32
    %257 = vector.broadcast %cst_62 : f32 to vector<4x32xf32>
    %258 = arith.maximumf %256, %257 : vector<4x32xf32>
    %cst_63 = arith.constant dense<0.000000e+00> : vector<4x4xf32>
    %259 = tpu.matmul %255, %217, %cst_63 {dimension_numbers = #tpu.dot_dimension_numbers<[1], [0], [0], [1], [0, 0, 1, 1], [], []>} : vector<4x32xf32>, vector<32x4xf32>, vector<4x4xf32> -> vector<4x4xf32>
    %cst_64 = arith.constant dense<0.000000e+00> : vector<4x4xf32>
    %260 = tpu.matmul %258, %218, %cst_64 {dimension_numbers = #tpu.dot_dimension_numbers<[1], [0], [0], [1], [0, 0, 1, 1], [], []>} : vector<4x32xf32>, vector<32x4xf32>, vector<4x4xf32> -> vector<4x4xf32>
    %261 = arith.addf %259, %260 : vector<4x4xf32>
    %262 = vector.broadcast %9 : vector<1x4xf32> to vector<4x4xf32>
    %263 = arith.addf %261, %262 : vector<4x4xf32>
    %cst_65 = arith.constant 0.000000e+00 : f32
    %264 = vector.broadcast %cst_65 : f32 to vector<4x4xf32>
    %265 = arith.subf %264, %263 : vector<4x4xf32>
    %266 = math.exp %265 : vector<4x4xf32>
    %cst_66 = arith.constant 1.000000e+00 : f32
    %267 = vector.broadcast %cst_66 : f32 to vector<4x4xf32>
    %268 = arith.addf %267, %266 : vector<4x4xf32>
    %269 = tpu.reciprocal %268 {approx = true} : vector<4x4xf32> -> vector<4x4xf32>
    %270 = vector.extract_strided_slice %204 {offsets = [0, 0], sizes = [4, 32], strides = [1, 1]} : vector<4x64xf32> to vector<4x32xf32>
    %cst_67 = arith.constant 0.000000e+00 : f32
    %271 = vector.broadcast %cst_67 : f32 to vector<4x32xf32>
    %272 = arith.maximumf %270, %271 : vector<4x32xf32>
    %273 = vector.extract_strided_slice %207 {offsets = [0, 32], sizes = [4, 32], strides = [1, 1]} : vector<4x64xf32> to vector<4x32xf32>
    %cst_68 = arith.constant 0.000000e+00 : f32
    %274 = vector.broadcast %cst_68 : f32 to vector<4x32xf32>
    %275 = arith.maximumf %273, %274 : vector<4x32xf32>
    %cst_69 = arith.constant dense<0.000000e+00> : vector<4x4xf32>
    %276 = tpu.matmul %272, %217, %cst_69 {dimension_numbers = #tpu.dot_dimension_numbers<[1], [0], [0], [1], [0, 0, 1, 1], [], []>} : vector<4x32xf32>, vector<32x4xf32>, vector<4x4xf32> -> vector<4x4xf32>
    %cst_70 = arith.constant dense<0.000000e+00> : vector<4x4xf32>
    %277 = tpu.matmul %275, %218, %cst_70 {dimension_numbers = #tpu.dot_dimension_numbers<[1], [0], [0], [1], [0, 0, 1, 1], [], []>} : vector<4x32xf32>, vector<32x4xf32>, vector<4x4xf32> -> vector<4x4xf32>
    %278 = arith.addf %276, %277 : vector<4x4xf32>
    %279 = vector.broadcast %9 : vector<1x4xf32> to vector<4x4xf32>
    %280 = arith.addf %278, %279 : vector<4x4xf32>
    %cst_71 = arith.constant 0.000000e+00 : f32
    %281 = vector.broadcast %cst_71 : f32 to vector<4x4xf32>
    %282 = arith.subf %281, %280 : vector<4x4xf32>
    %283 = math.exp %282 : vector<4x4xf32>
    %cst_72 = arith.constant 1.000000e+00 : f32
    %284 = vector.broadcast %cst_72 : f32 to vector<4x4xf32>
    %285 = arith.addf %284, %283 : vector<4x4xf32>
    %286 = tpu.reciprocal %285 {approx = true} : vector<4x4xf32> -> vector<4x4xf32>
    %287 = vector.extract_strided_slice %207 {offsets = [0, 0], sizes = [4, 32], strides = [1, 1]} : vector<4x64xf32> to vector<4x32xf32>
    %cst_73 = arith.constant 0.000000e+00 : f32
    %288 = vector.broadcast %cst_73 : f32 to vector<4x32xf32>
    %289 = arith.maximumf %287, %288 : vector<4x32xf32>
    %290 = vector.extract_strided_slice %204 {offsets = [0, 32], sizes = [4, 32], strides = [1, 1]} : vector<4x64xf32> to vector<4x32xf32>
    %cst_74 = arith.constant 0.000000e+00 : f32
    %291 = vector.broadcast %cst_74 : f32 to vector<4x32xf32>
    %292 = arith.maximumf %290, %291 : vector<4x32xf32>
    %cst_75 = arith.constant dense<0.000000e+00> : vector<4x4xf32>
    %293 = tpu.matmul %289, %217, %cst_75 {dimension_numbers = #tpu.dot_dimension_numbers<[1], [0], [0], [1], [0, 0, 1, 1], [], []>} : vector<4x32xf32>, vector<32x4xf32>, vector<4x4xf32> -> vector<4x4xf32>
    %cst_76 = arith.constant dense<0.000000e+00> : vector<4x4xf32>
    %294 = tpu.matmul %292, %218, %cst_76 {dimension_numbers = #tpu.dot_dimension_numbers<[1], [0], [0], [1], [0, 0, 1, 1], [], []>} : vector<4x32xf32>, vector<32x4xf32>, vector<4x4xf32> -> vector<4x4xf32>
    %295 = arith.addf %293, %294 : vector<4x4xf32>
    %296 = vector.broadcast %9 : vector<1x4xf32> to vector<4x4xf32>
    %297 = arith.addf %295, %296 : vector<4x4xf32>
    %cst_77 = arith.constant 0.000000e+00 : f32
    %298 = vector.broadcast %cst_77 : f32 to vector<4x4xf32>
    %299 = arith.subf %298, %297 : vector<4x4xf32>
    %300 = math.exp %299 : vector<4x4xf32>
    %cst_78 = arith.constant 1.000000e+00 : f32
    %301 = vector.broadcast %cst_78 : f32 to vector<4x4xf32>
    %302 = arith.addf %301, %300 : vector<4x4xf32>
    %303 = tpu.reciprocal %302 {approx = true} : vector<4x4xf32> -> vector<4x4xf32>
    %304 = vector.extract_strided_slice %210 {offsets = [0, 0], sizes = [4, 32], strides = [1, 1]} : vector<4x64xf32> to vector<4x32xf32>
    %cst_79 = arith.constant 0.000000e+00 : f32
    %305 = vector.broadcast %cst_79 : f32 to vector<4x32xf32>
    %306 = arith.maximumf %304, %305 : vector<4x32xf32>
    %307 = vector.extract_strided_slice %201 {offsets = [0, 32], sizes = [4, 32], strides = [1, 1]} : vector<4x64xf32> to vector<4x32xf32>
    %cst_80 = arith.constant 0.000000e+00 : f32
    %308 = vector.broadcast %cst_80 : f32 to vector<4x32xf32>
    %309 = arith.maximumf %307, %308 : vector<4x32xf32>
    %cst_81 = arith.constant dense<0.000000e+00> : vector<4x4xf32>
    %310 = tpu.matmul %306, %217, %cst_81 {dimension_numbers = #tpu.dot_dimension_numbers<[1], [0], [0], [1], [0, 0, 1, 1], [], []>} : vector<4x32xf32>, vector<32x4xf32>, vector<4x4xf32> -> vector<4x4xf32>
    %cst_82 = arith.constant dense<0.000000e+00> : vector<4x4xf32>
    %311 = tpu.matmul %309, %218, %cst_82 {dimension_numbers = #tpu.dot_dimension_numbers<[1], [0], [0], [1], [0, 0, 1, 1], [], []>} : vector<4x32xf32>, vector<32x4xf32>, vector<4x4xf32> -> vector<4x4xf32>
    %312 = arith.addf %310, %311 : vector<4x4xf32>
    %313 = vector.broadcast %9 : vector<1x4xf32> to vector<4x4xf32>
    %314 = arith.addf %312, %313 : vector<4x4xf32>
    %cst_83 = arith.constant 0.000000e+00 : f32
    %315 = vector.broadcast %cst_83 : f32 to vector<4x4xf32>
    %316 = arith.subf %315, %314 : vector<4x4xf32>
    %317 = math.exp %316 : vector<4x4xf32>
    %cst_84 = arith.constant 1.000000e+00 : f32
    %318 = vector.broadcast %cst_84 : f32 to vector<4x4xf32>
    %319 = arith.addf %318, %317 : vector<4x4xf32>
    %320 = tpu.reciprocal %319 {approx = true} : vector<4x4xf32> -> vector<4x4xf32>
    %321 = vector.extract_strided_slice %213 {offsets = [0, 0], sizes = [4, 32], strides = [1, 1]} : vector<4x64xf32> to vector<4x32xf32>
    %cst_85 = arith.constant 0.000000e+00 : f32
    %322 = vector.broadcast %cst_85 : f32 to vector<4x32xf32>
    %323 = arith.maximumf %321, %322 : vector<4x32xf32>
    %324 = vector.extract_strided_slice %198 {offsets = [0, 32], sizes = [4, 32], strides = [1, 1]} : vector<4x64xf32> to vector<4x32xf32>
    %cst_86 = arith.constant 0.000000e+00 : f32
    %325 = vector.broadcast %cst_86 : f32 to vector<4x32xf32>
    %326 = arith.maximumf %324, %325 : vector<4x32xf32>
    %cst_87 = arith.constant dense<0.000000e+00> : vector<4x4xf32>
    %327 = tpu.matmul %323, %217, %cst_87 {dimension_numbers = #tpu.dot_dimension_numbers<[1], [0], [0], [1], [0, 0, 1, 1], [], []>} : vector<4x32xf32>, vector<32x4xf32>, vector<4x4xf32> -> vector<4x4xf32>
    %cst_88 = arith.constant dense<0.000000e+00> : vector<4x4xf32>
    %328 = tpu.matmul %326, %218, %cst_88 {dimension_numbers = #tpu.dot_dimension_numbers<[1], [0], [0], [1], [0, 0, 1, 1], [], []>} : vector<4x32xf32>, vector<32x4xf32>, vector<4x4xf32> -> vector<4x4xf32>
    %329 = arith.addf %327, %328 : vector<4x4xf32>
    %330 = vector.broadcast %9 : vector<1x4xf32> to vector<4x4xf32>
    %331 = arith.addf %329, %330 : vector<4x4xf32>
    %cst_89 = arith.constant 0.000000e+00 : f32
    %332 = vector.broadcast %cst_89 : f32 to vector<4x4xf32>
    %333 = arith.subf %332, %331 : vector<4x4xf32>
    %334 = math.exp %333 : vector<4x4xf32>
    %cst_90 = arith.constant 1.000000e+00 : f32
    %335 = vector.broadcast %cst_90 : f32 to vector<4x4xf32>
    %336 = arith.addf %335, %334 : vector<4x4xf32>
    %337 = tpu.reciprocal %336 {approx = true} : vector<4x4xf32> -> vector<4x4xf32>
    %338 = vector.extract_strided_slice %216 {offsets = [0, 0], sizes = [4, 32], strides = [1, 1]} : vector<4x64xf32> to vector<4x32xf32>
    %cst_91 = arith.constant 0.000000e+00 : f32
    %339 = vector.broadcast %cst_91 : f32 to vector<4x32xf32>
    %340 = arith.maximumf %338, %339 : vector<4x32xf32>
    %341 = vector.extract_strided_slice %195 {offsets = [0, 32], sizes = [4, 32], strides = [1, 1]} : vector<4x64xf32> to vector<4x32xf32>
    %cst_92 = arith.constant 0.000000e+00 : f32
    %342 = vector.broadcast %cst_92 : f32 to vector<4x32xf32>
    %343 = arith.maximumf %341, %342 : vector<4x32xf32>
    %cst_93 = arith.constant dense<0.000000e+00> : vector<4x4xf32>
    %344 = tpu.matmul %340, %217, %cst_93 {dimension_numbers = #tpu.dot_dimension_numbers<[1], [0], [0], [1], [0, 0, 1, 1], [], []>} : vector<4x32xf32>, vector<32x4xf32>, vector<4x4xf32> -> vector<4x4xf32>
    %cst_94 = arith.constant dense<0.000000e+00> : vector<4x4xf32>
    %345 = tpu.matmul %343, %218, %cst_94 {dimension_numbers = #tpu.dot_dimension_numbers<[1], [0], [0], [1], [0, 0, 1, 1], [], []>} : vector<4x32xf32>, vector<32x4xf32>, vector<4x4xf32> -> vector<4x4xf32>
    %346 = arith.addf %344, %345 : vector<4x4xf32>
    %347 = vector.broadcast %9 : vector<1x4xf32> to vector<4x4xf32>
    %348 = arith.addf %346, %347 : vector<4x4xf32>
    %cst_95 = arith.constant 0.000000e+00 : f32
    %349 = vector.broadcast %cst_95 : f32 to vector<4x4xf32>
    %350 = arith.subf %349, %348 : vector<4x4xf32>
    %351 = math.exp %350 : vector<4x4xf32>
    %cst_96 = arith.constant 1.000000e+00 : f32
    %352 = vector.broadcast %cst_96 : f32 to vector<4x4xf32>
    %353 = arith.addf %352, %351 : vector<4x4xf32>
    %354 = tpu.reciprocal %353 {approx = true} : vector<4x4xf32> -> vector<4x4xf32>
    %355 = vector.shape_cast %235 : vector<4x4xf32> to vector<1x4x4xf32>
    %356 = vector.shape_cast %252 : vector<4x4xf32> to vector<1x4x4xf32>
    %357 = vector.shape_cast %269 : vector<4x4xf32> to vector<1x4x4xf32>
    %358 = vector.shape_cast %286 : vector<4x4xf32> to vector<1x4x4xf32>
    %359 = vector.shape_cast %303 : vector<4x4xf32> to vector<1x4x4xf32>
    %360 = vector.shape_cast %320 : vector<4x4xf32> to vector<1x4x4xf32>
    %361 = vector.shape_cast %337 : vector<4x4xf32> to vector<1x4x4xf32>
    %362 = vector.shape_cast %354 : vector<4x4xf32> to vector<1x4x4xf32>
    %363 = tpu.concatenate %355, %356, %357, %358, %359, %360, %361, %362 in 0 : vector<1x4x4xf32>, vector<1x4x4xf32>, vector<1x4x4xf32>, vector<1x4x4xf32>, vector<1x4x4xf32>, vector<1x4x4xf32>, vector<1x4x4xf32>, vector<1x4x4xf32> -> vector<8x4x4xf32>
    %c0_97 = arith.constant 0 : index
    %c0_98 = arith.constant 0 : index
    %c0_99 = arith.constant 0 : index
    %364 = vector.load %arg10[%c0_97, %c0_98, %c0_99] : memref<8x4x4xf32, #tpu.memory_space<vmem>>, vector<8x4x4xf32>
    tpu.vector_store %arg10[%c0_97, %c0_98, %c0_99], %363 {strides = array<i32>} : memref<8x4x4xf32, #tpu.memory_space<vmem>>, vector<8x4x4xf32>,
    return
  }
}

</mosaic_0001>

<bundles_post_ra>
// kernel: tpu_custom_call.1
= control target key start
LH: loop header
LB: loop body
LE: loop exit
PB: predicated region body
PF: predicated region fallthrough
CT: control target
= control target key end

     0   :  { %15 = vsyncpa [#allocation3], 0  ;;  %s6170_s0 = inlined_call_operand.vmem [shape: f32[8,4,1], index: 0, kind: input, shape index: {}]   ;;  %s6171_s1 = inlined_call_operand.vmem [shape: f32[1,64], index: 1, kind: input, shape index: {}]   ;;  %s6172_s2 = inlined_call_operand.vmem [shape: f32[1,64], index: 2, kind: input, shape index: {}]   ;;  %s6173_s3 = inlined_call_operand.vmem [shape: f32[64,64], index: 3, kind: input, shape index: {}]   ;;  %s6174_s4 = inlined_call_operand.hbm [shape: f32[64,64], index: 4, kind: input, shape index: {}]   ;;  %s6175_s5 = inlined_call_operand.hbm [shape: f32[64,64], index: 5, kind: input, shape index: {}]   ;;  %s6176_s6 = inlined_call_operand.vmem [shape: f32[1,64], index: 6, kind: input, shape index: {}]   ;;  %s6177_s7 = inlined_call_operand.hbm [shape: f32[64,64], index: 7, kind: input, shape index: {}]   ;;  %s6178_s8 = inlined_call_operand.vmem [shape: f32[64,4], index: 8, kind: input, shape index: {}]   ;;  %s6179_s9 = inlined_call_operand.vmem [shape: f32[1,4], index: 9, kind: input, shape index: {}]   ;;  %s6180_s10 = inlined_call_operand.vmem [shape: f32[8,4,4], index: 10, kind: output, shape index: {}]  }
   0x1   :  { %16 = vsyncpa [#allocation5], 0  ;;  %s4938_s13 = smov [#allocation4]   ;;  %s4939_s15 = smov [#allocation2]  }
   0x2   :  { %s42_s14 = sshll.u32 %s4938_s13, 4  ;;  %s30_s16 = sshll.u32 %s4939_s15, 4  ;;  %s43_s14 = int_to_ptr.vmem [resolvable:$true] %s42_s14  ;;  %s31_s16 = int_to_ptr.vmem [resolvable:$true] %s30_s16 }
   0x3   :  { %s4882_s17 = scalar_lea.vmem %s43_s14, 1024  ;;  %p4887_p1 = scmp.lt.s32.totalorder %s43_s14, %s43_s14 }
   0x4   :  { %p4883_p0 = scmp.ne.s32.totalorder %s43_s14, %s4882_s17  ;;  %p4888_p2 = scmp.lt.s32.totalorder %s4882_s17, %s4882_s17 }
   0x6   :  { %p4889_p3 = por %p4888_p2, %p4887_p1 }
   0x8   :  { %p4890_p4 = pnand %p4889_p3, %p4883_p0 }
   0xa   :  { %4893 = shalt.err (!%p4890_p4)
}
   0xb   :  { %s4940_s18 = smov 128   ;;  %s4941_s19 = smov 8  }
   0xc   :  { %48 = dma.hbm_to_vmem [thread:$0]  %s6175_s5, 1024, %s43_s14, [#allocation5], %s4940_s18, %s4940_s18, %s4941_s19  }
   0xd   :  { %s4902_s22 = scalar_lea.vmem %s31_s16, 1024  ;;  %p4907_p6 = scmp.lt.s32.totalorder %s31_s16, %s31_s16 }
   0xe   :  { %p4903_p5 = scmp.ne.s32.totalorder %s31_s16, %s4902_s22  ;;  %p4908_p7 = scmp.lt.s32.totalorder %s4902_s22, %s4902_s22 }
  0x10   :  { %p4909_p8 = por %p4908_p7, %p4907_p6 }
  0x12   :  { %p4910_p9 = pnand %p4909_p8, %p4903_p5 }
  0x14   :  { %4913 = shalt.err (!%p4910_p9)
}
  0x15   :  { %36 = dma.hbm_to_vmem [thread:$0]  %s6174_s4, 1024, %s31_s16, [#allocation3], %s4940_s18, %s4940_s18, %s4941_s19  }
  0x16   :  { %s4942_s25 = smov [#allocation6]  }
  0x17   :  { %s56_s26 = sshll.u32 %s4942_s25, 4  ;;  %s57_s26 = int_to_ptr.vmem [resolvable:$true] %s56_s26 }
  0x18   :  { %s4922_s27 = scalar_lea.vmem %s57_s26, 1024  ;;  %p4927_p11 = scmp.lt.s32.totalorder %s57_s26, %s57_s26 }
  0x19   :  { %p4923_p10 = scmp.ne.s32.totalorder %s57_s26, %s4922_s27  ;;  %p4928_p12 = scmp.lt.s32.totalorder %s4922_s27, %s4922_s27 }
  0x1b   :  { %p4929_p13 = por %p4928_p12, %p4927_p11 }
  0x1d   :  { %p4930_p0 = pnand %p4929_p13, %p4923_p10 }
  0x1f   :  { %4933 = shalt.err (!%p4930_p0)
}
  0x20   :  { %62 = dma.hbm_to_vmem [thread:$0]  %s6177_s7, 1024, %s57_s26, [#allocation5], %s4940_s18, %s4940_s18, %s4941_s19  }
  0x21   :  { %4934 = dma.done.wait [#allocation3], 1024  }
  0x22   :  { %4935 = vsyncadd [#allocation3], 4294966272 }
  0x23   :  { %4936 = dma.done.wait [#allocation5], 2048  }
  0x24   :  { %4937 = vsyncadd [#allocation5], 4294965248  ;;  %v4943_v0 = vmov 0   ;;  %v77_v1 = vld [vmem:[%s6170_s0 + $0x4] sm:$0xf]  ;;  %v4944_v5 = vmov 0.0   ;;  %v128_v18 = vlaneseq }
  0x25   :  { %4809 = vset.pattern.permute.xlu1 %v4943_v0  ;;  %4808 = vset.pattern.permute.xlu0 %v4943_v0  ;;  %v76_v2 = vld [vmem:[%s6170_s0] sm:$0xf]  ;;  %v82_v3 = vld [vmem:[%s6170_s0 + $0x18] sm:$0xf]  ;;  %v83_v4 = vld [vmem:[%s6170_s0 + $0x1c] sm:$0xf] }
  0x26   :  { %161 = vperm.xlu1 %4809, %v77_v1   ;;  %133 = vperm.xlu0 %4808, %v76_v2   ;;  %v5027_v6 = vld [vmem:[%s6173_s3 + $0x38] sm:$0xff]  ;;  %v81_v7 = vld [vmem:[%s6170_s0 + $0x14] sm:$0xf]  ;;  %v78_v8 = vld [vmem:[%s6170_s0 + $0x8] sm:$0xf]  ;;  %vm4945_vm0 = vmmov 0  }
  0x27   :  { %4053 = vmatprep.subr.mxu0 %v4944_v5  ;;  %4072 = vmatprep.subr.mxu1 %v4944_v5  ;;  %v5040_v9 = vld [vmem:[%s6173_s3 + $0x30] sm:$0xff]  ;;  %v5049_v10 = vld [vmem:[%s6173_s3 + $0x28] sm:$0xff]  ;;  %v5065_v13 = vld [vmem:[%s6173_s3 + $0x20] sm:$0xff]  ;;  %v5113_v21 = vand.u32 127, %v128_v18  ;;  %vm210_vm2 = vcmask 523264   ;;  %s4946_s21 = smov 96  }
  0x28   :  { %4054 = vmatpush3.msra.mxu0 %v5027_v6  ;;  %4073 = vmatpush3.msra.mxu1 %v5027_v6  ;;  %v80_v11 = vld [vmem:[%s6170_s0 + $0x10] sm:$0xf]  ;;  %v79_v12 = vld [vmem:[%s6170_s0 + $0xc] sm:$0xf]  ;;  %v5073_v14 = vld [vmem:[%s6173_s3 + $0x18] sm:$0xff]  ;;  %vm2404_vm3 = vcmask 261120  }
  0x29   :  { %4055 = vmatprep.subr.mxu0 %v4944_v5  ;;  %4074 = vmatprep.subr.mxu1 %v4944_v5  ;;  %v5081_v15 = vld [vmem:[%s6173_s3 + $0x10] sm:$0xff]  ;;  %v5090_v16 = vld [vmem:[%s6173_s3 + $0x8] sm:$0xff]  ;;  %v5099_v17 = vld [vmem:[%s6173_s3] sm:$0xff]  ;;  %vm130_vm1 = vcmp.lt.s32.totalorder %v5113_v21, 32  ;;  %vm3638_vm4 = vcmask 27648  }
  0x2a   :  { %167 = vperm.xlu1 %4809, %v82_v3   ;;  %145 = vperm.xlu0 %4808, %v83_v4   ;;  %v3653_v22 = vld [vmem:[%s6171_s1] ss:$0 sm:$0xff]  ;;  %v5315_v21 = vld [vmem:[#allocation2 + $0x8] sm:$0xff] }
  0x2b   :  { %4056 = vmatpush3.msra.mxu0 %v5040_v9  ;;  %4075 = vmatpush3.msra.mxu1 %v5040_v9  ;;  %v5122_v26 = vld [vmem:[%s6172_s2] ss:$0 sm:$0xff] }
  0x2c   :  { %4057 = vmatprep.subr.mxu0 %v4944_v5  ;;  %4069 = vmatprep.mubr.msk.f32.mxu0 %vm4945_vm0, %v4944_v5  ;;  %v5303_v18 = vld [vmem:[#allocation2 + $0x20] sm:$0xff] }
  0x2d   :  { %4058 = vmatpush3.msra.mxu0 %v5049_v10  ;;  %4076 = vmatprep.subr.mxu1 %v4944_v5 }
  0x2e   :  { %181 = vperm.xlu1 %4809, %v81_v7   ;;  %175 = vperm.xlu0 %4808, %v78_v8  }
  0x2f   :  { %4059 = vmatprep.subr.mxu0 %v4944_v5  ;;  %4077 = vmatpush3.msra.mxu1 %v5049_v10 }
  0x30   :  { %4060 = vmatpush3.msra.mxu0 %v5065_v13  ;;  %4078 = vmatprep.subr.mxu1 %v4944_v5 }
  0x31   :  { %4061 = vmatprep.subr.mxu0 %v4944_v5  ;;  %4079 = vmatpush3.msra.mxu1 %v5065_v13 }
  0x32   :  { %195 = vperm.xlu1 %4809, %v80_v11   ;;  %189 = vperm.xlu0 %4808, %v79_v12  }
  0x33   :  { %4062 = vmatpush3.msra.mxu0 %v5073_v14  ;;  %4080 = vmatprep.subr.mxu1 %v4944_v5 }
  0x34   :  { %4063 = vmatprep.subr.mxu0 %v4944_v5  ;;  %4081 = vmatpush3.msra.mxu1 %v5073_v14 }
  0x35   :  { %4064 = vmatpush3.msra.mxu0 %v5081_v15  ;;  %4082 = vmatprep.subr.mxu1 %v4944_v5 }
  0x36   :  { %4065 = vmatprep.subr.mxu0 %v4944_v5  ;;  %4083 = vmatpush3.msra.mxu1 %v5081_v15 }
  0x37   :  { %4066 = vmatpush3.msra.mxu0 %v5090_v16  ;;  %4084 = vmatprep.subr.mxu1 %v4944_v5 }
  0x38   :  { %4067 = vmatprep.subr.mxu0 %v4944_v5  ;;  %4085 = vmatpush3.msra.mxu1 %v5090_v16 }
  0x39   :  { %4068 = vmatpush3.msra.mxu0 %v5099_v17  ;;  %4086 = vmatprep.subr.mxu1 %v4944_v5 }
  0x3a   :  { %4087 = vmatpush3.msra.mxu1 %v5099_v17  ;;  %4088 = vmatprep.mubr.msk.f32.mxu1 %vm4945_vm0, %v4944_v5 }
  0x3b   :  { %4091 = vmatprep.subr.mxu0 %v4944_v5  ;;  %4110 = vmatprep.subr.mxu1 %v4944_v5 }
  0xa1   :  { %v162_v19 = vpop.permute.xlu1 %161  ;;  %v134_v20 = vpop.permute.xlu0 %133 }
  0xa2   :  { %v142_v25 = vmul.f32 %v3653_v22, %v134_v20  ;;  %v5167_v42 = vmul.f32 %v3653_v22, %v162_v19  ;;  %v5307_v19 = vld [vmem:[#allocation2 + $0x18] sm:$0xff]  ;;  %v5311_v20 = vld [vmem:[#allocation2 + $0x10] sm:$0xff] }
  0xa5   :  { %v168_v23 = vpop.permute.xlu1 %167  ;;  %v146_v24 = vpop.permute.xlu0 %145 }
  0xa6   :  { %v148_v27 = vmul.f32 %v3653_v22, %v146_v24  ;;  %v5169_v43 = vmul.f32 %v3653_v22, %v168_v23  ;;  %v5390_v23 = vld [vmem:[#allocation4 + $0x38] sm:$0xff]  ;;  %v5396_v24 = vld [vmem:[#allocation4 + $0x30] sm:$0xff] }
  0xa8   :  { %v151_v28 = vsel %vm130_vm1, %v142_v25, %v148_v27  ;;  %v5128_v29 = vsel %vm130_vm1, %v148_v27, %v142_v25  ;;  %v171_v44 = vsel %vm130_vm1, %v5167_v42, %v5169_v43  ;;  %v5398_v25 = vld [vmem:[#allocation4 + $0x28] sm:$0xff]  ;;  %v5404_v27 = vld [vmem:[#allocation4 + $0x20] sm:$0xff] }
  0xa9   :  { %v158_v30 = vadd.f32 %v5122_v26, %v151_v28  ;;  %v182_v31 = vpop.permute.xlu1 %181  ;;  %v176_v32 = vpop.permute.xlu0 %175  ;;  %v172_v45 = vadd.f32 %v5122_v26, %v171_v44  ;;  %v5410_v28 = vld [vmem:[#allocation4 + $0x18] sm:$0xff] }
  0xaa   :  { %v184_v33 = vmul.f32 %v3653_v22, %v182_v31  ;;  %v178_v34 = vmul.f32 %v3653_v22, %v176_v32  ;;  %v5422_v31 = vld [vmem:[#allocation4 + $0x8] sm:$0xff]  ;;  %v5432_v32 = vld [vmem:[#allocation4] sm:$0xff] }
  0xab   :  { %4810 = vtanh.f32 %v158_v30  ;;  %v5416_v30 = vld [vmem:[#allocation4 + $0x10] sm:$0xff] }
  0xac   :  { %v5133_v35 = vsel %vm130_vm1, %v184_v33, %v178_v34  ;;  %v185_v50 = vsel %vm130_vm1, %v178_v34, %v184_v33  ;;  %v208_v33 = vadd.f32 %v5122_v26, %v5128_v29 }
  0xad   :  { %v196_v36 = vpop.permute.xlu1 %195  ;;  %v190_v37 = vpop.permute.xlu0 %189  ;;  %v186_v51 = vadd.f32 %v5122_v26, %v185_v50  ;;  %v204_v3 = vadd.f32 %v5122_v26, %v5133_v35  ;;  %v5610_v50 = vld [vmem:[#allocation6 + $0x28] sm:$0xff] }
  0xae   :  { %v5135_v38 = vmul.f32 %v3653_v22, %v196_v36  ;;  %v5137_v39 = vmul.f32 %v3653_v22, %v190_v37  ;;  %v5319_v22 = vld [vmem:[#allocation2] sm:$0xff] }
  0xb0   :  { %v5143_v40 = vsel %vm130_vm1, %v5135_v38, %v5137_v39  ;;  %v199_v56 = vsel %vm130_vm1, %v5137_v39, %v5135_v38 }
  0xb1   :  { %v200_v57 = vadd.f32 %v5122_v26, %v199_v56  ;;  %v202_v62 = vadd.f32 %v5122_v26, %v5143_v40 }
  0xb8   :  { %v5145_v41 = vpop.eup %4810 }
  0xb9   :  { %4070 = vmatmul.mubr.msk.f32.vlgmr.msra.gmra.mxu0 %vm210_vm2, %v5145_v41 }
  0xba   :  { %4092 = vmatpush3.msra.mxu0 %v5027_v6  ;;  %4107 = vmatprep.mubr.msk.f32.mxu0 %vm4945_vm0, %v4944_v5 }
  0xbb   :  { %4093 = vmatprep.subr.mxu0 %v4944_v5 }
  0xbc   :  { %4094 = vmatpush3.msra.mxu0 %v5040_v9 }
  0xbd   :  { %4095 = vmatprep.subr.mxu0 %v4944_v5 }
  0xbe   :  { %4096 = vmatpush3.msra.mxu0 %v5049_v10 }
  0xbf   :  { %4097 = vmatprep.subr.mxu0 %v4944_v5 }
  0xc0   :  { %4098 = vmatpush3.msra.mxu0 %v5065_v13 }
  0xc1   :  { %4099 = vmatprep.subr.mxu0 %v4944_v5 }
  0xc2   :  { %4100 = vmatpush3.msra.mxu0 %v5073_v14 }
  0xc3   :  { %4101 = vmatprep.subr.mxu0 %v4944_v5 }
  0xc4   :  { %4102 = vmatpush3.msra.mxu0 %v5081_v15 }
  0xc5   :  { %4103 = vmatprep.subr.mxu0 %v4944_v5 }
  0xc6   :  { %4104 = vmatpush3.msra.mxu0 %v5090_v16 }
  0xc7   :  { %4105 = vmatprep.subr.mxu0 %v4944_v5 }
  0xc8   :  { %4106 = vmatpush3.msra.mxu0 %v5099_v17 }
  0xc9   :  { %4129 = vmatprep.subr.mxu0 %v4944_v5 }
 0x179   :  { %v280_v46 = vpop.f32.mrf.mxu0 }
 0x17a   :  { %v284_v47 = vadd.f32 %v280_v46, %v172_v45 }
 0x17b   :  { %v4071_v48 = vpop.f32.mrf.mxu0 }
 0x17c   :  { %4812 = vtanh.f32 %v284_v47  ;;  %v5599_v47 = vld [vmem:[#allocation6 + $0x38] sm:$0xff]  ;;  %v5604_v48 = vld [vmem:[#allocation6 + $0x30] sm:$0xff] }
 0x189   :  { %v5176_v49 = vpop.eup %4812 }
 0x18a   :  { %4089 = vmatmul.mubr.msk.f32.vlgmr.msra.gmra.mxu1 %vm210_vm2, %v5176_v49 }
 0x18b   :  { %4111 = vmatpush3.msra.mxu1 %v5027_v6  ;;  %4126 = vmatprep.mubr.msk.f32.mxu1 %vm4945_vm0, %v4944_v5 }
 0x18c   :  { %4112 = vmatprep.subr.mxu1 %v4944_v5 }
 0x18d   :  { %4113 = vmatpush3.msra.mxu1 %v5040_v9 }
 0x18e   :  { %4114 = vmatprep.subr.mxu1 %v4944_v5 }
 0x18f   :  { %4115 = vmatpush3.msra.mxu1 %v5049_v10 }
 0x190   :  { %4116 = vmatprep.subr.mxu1 %v4944_v5 }
 0x191   :  { %4117 = vmatpush3.msra.mxu1 %v5065_v13 }
 0x192   :  { %4118 = vmatprep.subr.mxu1 %v4944_v5 }
 0x193   :  { %4119 = vmatpush3.msra.mxu1 %v5073_v14 }
 0x194   :  { %4120 = vmatprep.subr.mxu1 %v4944_v5 }
 0x195   :  { %4121 = vmatpush3.msra.mxu1 %v5081_v15 }
 0x196   :  { %4122 = vmatprep.subr.mxu1 %v4944_v5 }
 0x197   :  { %4123 = vmatpush3.msra.mxu1 %v5090_v16 }
 0x198   :  { %4124 = vmatprep.subr.mxu1 %v4944_v5 }
 0x199   :  { %4125 = vmatpush3.msra.mxu1 %v5099_v17 }
 0x19a   :  { %4148 = vmatprep.subr.mxu1 %v4944_v5 }
 0x24a   :  { %v355_v52 = vpop.f32.mrf.mxu1 }
 0x24b   :  { %v359_v53 = vadd.f32 %v355_v52, %v186_v51  ;;  %v5616_v51 = vld [vmem:[#allocation6 + $0x20] sm:$0xff]  ;;  %v5622_v52 = vld [vmem:[#allocation6 + $0x18] sm:$0xff] }
 0x24c   :  { %v4090_v54 = vpop.f32.mrf.mxu1 }
 0x24d   :  { %4814 = vtanh.f32 %v359_v53  ;;  %v5628_v53 = vld [vmem:[#allocation6 + $0x10] sm:$0xff] }
 0x25a   :  { %v5201_v55 = vpop.eup %4814 }
 0x25b   :  { %4108 = vmatmul.mubr.msk.f32.vlgmr.msra.gmra.mxu0 %vm210_vm2, %v5201_v55 }
 0x25c   :  { %4130 = vmatpush3.msra.mxu0 %v5027_v6  ;;  %4145 = vmatprep.mubr.msk.f32.mxu0 %vm4945_vm0, %v4944_v5 }
 0x25d   :  { %4131 = vmatprep.subr.mxu0 %v4944_v5 }
 0x25e   :  { %4132 = vmatpush3.msra.mxu0 %v5040_v9 }
 0x25f   :  { %4133 = vmatprep.subr.mxu0 %v4944_v5 }
 0x260   :  { %4134 = vmatpush3.msra.mxu0 %v5049_v10 }
 0x261   :  { %4135 = vmatprep.subr.mxu0 %v4944_v5 }
 0x262   :  { %4136 = vmatpush3.msra.mxu0 %v5065_v13 }
 0x263   :  { %4137 = vmatprep.subr.mxu0 %v4944_v5 }
 0x264   :  { %4138 = vmatpush3.msra.mxu0 %v5073_v14 }
 0x265   :  { %4139 = vmatprep.subr.mxu0 %v4944_v5 }
 0x266   :  { %4140 = vmatpush3.msra.mxu0 %v5081_v15 }
 0x267   :  { %4141 = vmatprep.subr.mxu0 %v4944_v5 }
 0x268   :  { %4142 = vmatpush3.msra.mxu0 %v5090_v16 }
 0x269   :  { %4143 = vmatprep.subr.mxu0 %v4944_v5 }
 0x26a   :  { %4144 = vmatpush3.msra.mxu0 %v5099_v17 }
 0x26b   :  { %4167 = vmatprep.subr.mxu0 %v4944_v5 }
 0x31b   :  { %v430_v58 = vpop.f32.mrf.mxu0 }
 0x31c   :  { %v434_v59 = vadd.f32 %v430_v58, %v200_v57  ;;  %v5642_v57 = vld [vmem:[#allocation6 + $0x8] sm:$0xff] }
 0x31d   :  { %v4109_v60 = vpop.f32.mrf.mxu0 }
 0x31e   :  { %4816 = vtanh.f32 %v434_v59 }
 0x32b   :  { %v5228_v61 = vpop.eup %4816 }
 0x32c   :  { %4127 = vmatmul.mubr.msk.f32.vlgmr.msra.gmra.mxu1 %vm210_vm2, %v5228_v61 }
 0x32d   :  { %4149 = vmatpush3.msra.mxu1 %v5027_v6  ;;  %4164 = vmatprep.mubr.msk.f32.mxu1 %vm4945_vm0, %v4944_v5 }
 0x32e   :  { %4150 = vmatprep.subr.mxu1 %v4944_v5 }
 0x32f   :  { %4151 = vmatpush3.msra.mxu1 %v5040_v9 }
 0x330   :  { %4152 = vmatprep.subr.mxu1 %v4944_v5 }
 0x331   :  { %4153 = vmatpush3.msra.mxu1 %v5049_v10 }
 0x332   :  { %4154 = vmatprep.subr.mxu1 %v4944_v5 }
 0x333   :  { %4155 = vmatpush3.msra.mxu1 %v5065_v13 }
 0x334   :  { %4156 = vmatprep.subr.mxu1 %v4944_v5 }
 0x335   :  { %4157 = vmatpush3.msra.mxu1 %v5073_v14 }
 0x336   :  { %4158 = vmatprep.subr.mxu1 %v4944_v5 }
 0x337   :  { %4159 = vmatpush3.msra.mxu1 %v5081_v15 }
 0x338   :  { %4160 = vmatprep.subr.mxu1 %v4944_v5 }
 0x339   :  { %4161 = vmatpush3.msra.mxu1 %v5090_v16 }
 0x33a   :  { %4162 = vmatprep.subr.mxu1 %v4944_v5 }
 0x33b   :  { %4163 = vmatpush3.msra.mxu1 %v5099_v17 }
 0x33c   :  { %4186 = vmatprep.subr.mxu1 %v4944_v5 }
 0x3ec   :  { %v505_v63 = vpop.f32.mrf.mxu1 }
 0x3ed   :  { %v509_v0 = vadd.f32 %v505_v63, %v202_v62 }
 0x3ee   :  { %v4128_v1 = vpop.f32.mrf.mxu1 }
 0x3ef   :  { %4818 = vtanh.f32 %v509_v0 }
 0x3fc   :  { %v5252_v2 = vpop.eup %4818 }
 0x3fd   :  { %4146 = vmatmul.mubr.msk.f32.vlgmr.msra.gmra.mxu0 %vm210_vm2, %v5252_v2 }
 0x3fe   :  { %4168 = vmatpush3.msra.mxu0 %v5027_v6  ;;  %4183 = vmatprep.mubr.msk.f32.mxu0 %vm4945_vm0, %v4944_v5 }
 0x3ff   :  { %4169 = vmatprep.subr.mxu0 %v4944_v5 }
 0x400   :  { %4170 = vmatpush3.msra.mxu0 %v5040_v9  ;;  %v205_v9 = vsel %vm130_vm1, %v5169_v43, %v5167_v42 }
 0x401   :  { %4171 = vmatprep.subr.mxu0 %v4944_v5 }
 0x402   :  { %4172 = vmatpush3.msra.mxu0 %v5049_v10  ;;  %v206_v10 = vadd.f32 %v5122_v26, %v205_v9 }
 0x403   :  { %4173 = vmatprep.subr.mxu0 %v4944_v5 }
 0x404   :  { %4174 = vmatpush3.msra.mxu0 %v5065_v13 }
 0x405   :  { %4175 = vmatprep.subr.mxu0 %v4944_v5 }
 0x406   :  { %4176 = vmatpush3.msra.mxu0 %v5073_v14  ;;  %v5287_v14 = vld [vmem:[#allocation2 + $0x38] sm:$0xff] }
 0x407   :  { %4177 = vmatprep.subr.mxu0 %v4944_v5 }
 0x408   :  { %4178 = vmatpush3.msra.mxu0 %v5081_v15 }
 0x409   :  { %4179 = vmatprep.subr.mxu0 %v4944_v5 }
 0x40a   :  { %4180 = vmatpush3.msra.mxu0 %v5090_v16  ;;  %v5293_v16 = vld [vmem:[#allocation2 + $0x30] sm:$0xff] }
 0x40b   :  { %4181 = vmatprep.subr.mxu0 %v4944_v5 }
 0x40c   :  { %4182 = vmatpush3.msra.mxu0 %v5099_v17  ;;  %v5299_v17 = vld [vmem:[#allocation2 + $0x28] sm:$0xff] }
 0x40d   :  { %4205 = vmatprep.subr.mxu0 %v4944_v5 }
 0x4bd   :  { %v580_v4 = vpop.f32.mrf.mxu0 }
 0x4be   :  { %v584_v6 = vadd.f32 %v580_v4, %v204_v3 }
 0x4bf   :  { %v4147_v7 = vpop.f32.mrf.mxu0 }
 0x4c0   :  { %4820 = vtanh.f32 %v584_v6 }
 0x4cd   :  { %v5276_v8 = vpop.eup %4820 }
 0x4ce   :  { %4165 = vmatmul.mubr.msk.f32.vlgmr.msra.gmra.mxu1 %vm210_vm2, %v5276_v8 }
 0x4cf   :  { %4202 = vmatprep.mubr.msk.f32.mxu1 %vm4945_vm0, %v4944_v5  ;;  %4187 = vmatpush3.msra.mxu1 %v5390_v23 }
 0x4d0   :  { %4188 = vmatprep.subr.mxu1 %v4944_v5 }
 0x4d1   :  { %4189 = vmatpush3.msra.mxu1 %v5396_v24 }
 0x4d2   :  { %4190 = vmatprep.subr.mxu1 %v4944_v5 }
 0x4d3   :  { %4191 = vmatpush3.msra.mxu1 %v5398_v25 }
 0x4d4   :  { %4192 = vmatprep.subr.mxu1 %v4944_v5 }
 0x4d5   :  { %4193 = vmatpush3.msra.mxu1 %v5404_v27 }
 0x4d6   :  { %4194 = vmatprep.subr.mxu1 %v4944_v5 }
 0x4d7   :  { %4195 = vmatpush3.msra.mxu1 %v5410_v28 }
 0x4d8   :  { %4196 = vmatprep.subr.mxu1 %v4944_v5 }
 0x4d9   :  { %4197 = vmatpush3.msra.mxu1 %v5416_v30 }
 0x4da   :  { %4198 = vmatprep.subr.mxu1 %v4944_v5 }
 0x4db   :  { %4199 = vmatpush3.msra.mxu1 %v5422_v31 }
 0x4dc   :  { %4200 = vmatprep.subr.mxu1 %v4944_v5 }
 0x4dd   :  { %4201 = vmatpush3.msra.mxu1 %v5432_v32 }
 0x4de   :  { %4224 = vmatprep.subr.mxu1 %v4944_v5 }
 0x58e   :  { %v655_v11 = vpop.f32.mrf.mxu1 }
 0x58f   :  { %v659_v12 = vadd.f32 %v655_v11, %v206_v10 }
 0x590   :  { %v4166_v13 = vpop.f32.mrf.mxu1 }
 0x591   :  { %4822 = vtanh.f32 %v659_v12 }
 0x59e   :  { %v5289_v15 = vpop.eup %4822 }
 0x59f   :  { %4184 = vmatmul.mubr.msk.f32.vlgmr.msra.gmra.mxu0 %vm210_vm2, %v5289_v15 }
 0x5a0   :  { %4206 = vmatpush3.msra.mxu0 %v5287_v14  ;;  %4221 = vmatprep.mubr.msk.f32.mxu0 %vm4945_vm0, %v4944_v5 }
 0x5a1   :  { %4207 = vmatprep.subr.mxu0 %v4944_v5 }
 0x5a2   :  { %4208 = vmatpush3.msra.mxu0 %v5293_v16 }
 0x5a3   :  { %4209 = vmatprep.subr.mxu0 %v4944_v5 }
 0x5a4   :  { %4210 = vmatpush3.msra.mxu0 %v5299_v17 }
 0x5a5   :  { %4211 = vmatprep.subr.mxu0 %v4944_v5 }
 0x5a6   :  { %4212 = vmatpush3.msra.mxu0 %v5303_v18 }
 0x5a7   :  { %4213 = vmatprep.subr.mxu0 %v4944_v5 }
 0x5a8   :  { %4214 = vmatpush3.msra.mxu0 %v5307_v19 }
 0x5a9   :  { %4215 = vmatprep.subr.mxu0 %v4944_v5 }
 0x5aa   :  { %4216 = vmatpush3.msra.mxu0 %v5311_v20 }
 0x5ab   :  { %4217 = vmatprep.subr.mxu0 %v4944_v5 }
 0x5ac   :  { %4218 = vmatpush3.msra.mxu0 %v5315_v21 }
 0x5ad   :  { %4219 = vmatprep.subr.mxu0 %v4944_v5 }
 0x5ae   :  { %4220 = vmatpush3.msra.mxu0 %v5319_v22 }
 0x5af   :  { %4222 = vmatmul.mubr.msk.f32.vlgmr.msra.gmra.mxu0 %vm210_vm2, %v5145_v41  ;;  %4243 = vmatprep.subr.mxu0 %v4944_v5 }
 0x5b0   :  { %4244 = vmatpush3.msra.mxu0 %v5287_v14  ;;  %4259 = vmatprep.mubr.msk.f32.mxu0 %vm4945_vm0, %v4944_v5 }
 0x5b1   :  { %4245 = vmatprep.subr.mxu0 %v4944_v5 }
 0x5b2   :  { %4246 = vmatpush3.msra.mxu0 %v5293_v16 }
 0x5b3   :  { %4247 = vmatprep.subr.mxu0 %v4944_v5 }
 0x5b4   :  { %4248 = vmatpush3.msra.mxu0 %v5299_v17 }
 0x5b5   :  { %4249 = vmatprep.subr.mxu0 %v4944_v5 }
 0x5b6   :  { %4250 = vmatpush3.msra.mxu0 %v5303_v18 }
 0x5b7   :  { %4251 = vmatprep.subr.mxu0 %v4944_v5 }
 0x5b8   :  { %4252 = vmatpush3.msra.mxu0 %v5307_v19 }
 0x5b9   :  { %4253 = vmatprep.subr.mxu0 %v4944_v5 }
 0x5ba   :  { %4254 = vmatpush3.msra.mxu0 %v5311_v20 }
 0x5bb   :  { %4255 = vmatprep.subr.mxu0 %v4944_v5 }
 0x5bc   :  { %4256 = vmatpush3.msra.mxu0 %v5315_v21 }
 0x5bd   :  { %4257 = vmatprep.subr.mxu0 %v4944_v5 }
 0x5be   :  { %4258 = vmatpush3.msra.mxu0 %v5319_v22 }
 0x5bf   :  { %4260 = vmatmul.mubr.msk.f32.vlgmr.msra.gmra.mxu0 %vm210_vm2, %v5176_v49  ;;  %4281 = vmatprep.subr.mxu0 %v4944_v5 }
 0x5c0   :  { %4282 = vmatpush3.msra.mxu0 %v5287_v14  ;;  %4297 = vmatprep.mubr.msk.f32.mxu0 %vm4945_vm0, %v4944_v5 }
 0x5c1   :  { %4283 = vmatprep.subr.mxu0 %v4944_v5 }
 0x5c2   :  { %4284 = vmatpush3.msra.mxu0 %v5293_v16 }
 0x5c3   :  { %4285 = vmatprep.subr.mxu0 %v4944_v5 }
 0x5c4   :  { %4286 = vmatpush3.msra.mxu0 %v5299_v17 }
 0x5c5   :  { %4287 = vmatprep.subr.mxu0 %v4944_v5 }
 0x5c6   :  { %4288 = vmatpush3.msra.mxu0 %v5303_v18 }
 0x5c7   :  { %4289 = vmatprep.subr.mxu0 %v4944_v5 }
 0x5c8   :  { %4290 = vmatpush3.msra.mxu0 %v5307_v19 }
 0x5c9   :  { %4291 = vmatprep.subr.mxu0 %v4944_v5 }
 0x5ca   :  { %4292 = vmatpush3.msra.mxu0 %v5311_v20 }
 0x5cb   :  { %4293 = vmatprep.subr.mxu0 %v4944_v5 }
 0x5cc   :  { %4294 = vmatpush3.msra.mxu0 %v5315_v21 }
 0x5cd   :  { %4295 = vmatprep.subr.mxu0 %v4944_v5 }
 0x5ce   :  { %4296 = vmatpush3.msra.mxu0 %v5319_v22 }
 0x5cf   :  { %4298 = vmatmul.mubr.msk.f32.vlgmr.msra.gmra.mxu0 %vm210_vm2, %v5201_v55  ;;  %4319 = vmatprep.subr.mxu0 %v4944_v5 }
 0x5d0   :  { %4320 = vmatpush3.msra.mxu0 %v5287_v14  ;;  %4335 = vmatprep.mubr.msk.f32.mxu0 %vm4945_vm0, %v4944_v5 }
 0x5d1   :  { %4321 = vmatprep.subr.mxu0 %v4944_v5 }
 0x5d2   :  { %4322 = vmatpush3.msra.mxu0 %v5293_v16 }
 0x5d3   :  { %4323 = vmatprep.subr.mxu0 %v4944_v5 }
 0x5d4   :  { %4324 = vmatpush3.msra.mxu0 %v5299_v17 }
 0x5d5   :  { %4325 = vmatprep.subr.mxu0 %v4944_v5 }
 0x5d6   :  { %4326 = vmatpush3.msra.mxu0 %v5303_v18 }
 0x5d7   :  { %4327 = vmatprep.subr.mxu0 %v4944_v5 }
 0x5d8   :  { %4328 = vmatpush3.msra.mxu0 %v5307_v19 }
 0x5d9   :  { %4329 = vmatprep.subr.mxu0 %v4944_v5 }
 0x5da   :  { %4330 = vmatpush3.msra.mxu0 %v5311_v20 }
 0x5db   :  { %4331 = vmatprep.subr.mxu0 %v4944_v5 }
 0x5dc   :  { %4332 = vmatpush3.msra.mxu0 %v5315_v21 }
 0x5dd   :  { %4333 = vmatprep.subr.mxu0 %v4944_v5 }
 0x5de   :  { %4334 = vmatpush3.msra.mxu0 %v5319_v22 }
 0x5df   :  { %4336 = vmatmul.mubr.msk.f32.vlgmr.msra.gmra.mxu0 %vm210_vm2, %v5228_v61  ;;  %4357 = vmatprep.subr.mxu0 %v4944_v5 }
 0x5e0   :  { %4358 = vmatpush3.msra.mxu0 %v5287_v14  ;;  %4373 = vmatprep.mubr.msk.f32.mxu0 %vm4945_vm0, %v4944_v5 }
 0x5e1   :  { %4359 = vmatprep.subr.mxu0 %v4944_v5 }
 0x5e2   :  { %4360 = vmatpush3.msra.mxu0 %v5293_v16 }
 0x5e3   :  { %4361 = vmatprep.subr.mxu0 %v4944_v5 }
 0x5e4   :  { %4362 = vmatpush3.msra.mxu0 %v5299_v17 }
 0x5e5   :  { %4363 = vmatprep.subr.mxu0 %v4944_v5 }
 0x5e6   :  { %4364 = vmatpush3.msra.mxu0 %v5303_v18 }
 0x5e7   :  { %4365 = vmatprep.subr.mxu0 %v4944_v5 }
 0x5e8   :  { %4366 = vmatpush3.msra.mxu0 %v5307_v19 }
 0x5e9   :  { %4367 = vmatprep.subr.mxu0 %v4944_v5 }
 0x5ea   :  { %4368 = vmatpush3.msra.mxu0 %v5311_v20 }
 0x5eb   :  { %4369 = vmatprep.subr.mxu0 %v4944_v5 }
 0x5ec   :  { %4370 = vmatpush3.msra.mxu0 %v5315_v21 }
 0x5ed   :  { %4371 = vmatprep.subr.mxu0 %v4944_v5 }
 0x5ee   :  { %4372 = vmatpush3.msra.mxu0 %v5319_v22 }
 0x5ef   :  { %4374 = vmatmul.mubr.msk.f32.vlgmr.msra.gmra.mxu0 %vm210_vm2, %v5252_v2  ;;  %4395 = vmatprep.subr.mxu0 %v4944_v5 }
 0x5f0   :  { %4396 = vmatpush3.msra.mxu0 %v5287_v14  ;;  %4411 = vmatprep.mubr.msk.f32.mxu0 %vm4945_vm0, %v4944_v5 }
 0x5f1   :  { %4397 = vmatprep.subr.mxu0 %v4944_v5 }
 0x5f2   :  { %4398 = vmatpush3.msra.mxu0 %v5293_v16 }
 0x5f3   :  { %4399 = vmatprep.subr.mxu0 %v4944_v5 }
 0x5f4   :  { %4400 = vmatpush3.msra.mxu0 %v5299_v17 }
 0x5f5   :  { %4401 = vmatprep.subr.mxu0 %v4944_v5 }
 0x5f6   :  { %4402 = vmatpush3.msra.mxu0 %v5303_v18 }
 0x5f7   :  { %4403 = vmatprep.subr.mxu0 %v4944_v5 }
 0x5f8   :  { %4404 = vmatpush3.msra.mxu0 %v5307_v19 }
 0x5f9   :  { %4405 = vmatprep.subr.mxu0 %v4944_v5 }
 0x5fa   :  { %4406 = vmatpush3.msra.mxu0 %v5311_v20 }
 0x5fb   :  { %4407 = vmatprep.subr.mxu0 %v4944_v5 }
 0x5fc   :  { %4408 = vmatpush3.msra.mxu0 %v5315_v21 }
 0x5fd   :  { %4409 = vmatprep.subr.mxu0 %v4944_v5 }
 0x5fe   :  { %4410 = vmatpush3.msra.mxu0 %v5319_v22 }
 0x5ff   :  { %4412 = vmatmul.mubr.msk.f32.vlgmr.msra.gmra.mxu0 %vm210_vm2, %v5276_v8  ;;  %4433 = vmatprep.subr.mxu0 %v4944_v5 }
 0x600   :  { %4434 = vmatpush3.msra.mxu0 %v5287_v14  ;;  %4449 = vmatprep.mubr.msk.f32.mxu0 %vm4945_vm0, %v4944_v5 }
 0x601   :  { %4435 = vmatprep.subr.mxu0 %v4944_v5 }
 0x602   :  { %4436 = vmatpush3.msra.mxu0 %v5293_v16 }
 0x603   :  { %4437 = vmatprep.subr.mxu0 %v4944_v5 }
 0x604   :  { %4438 = vmatpush3.msra.mxu0 %v5299_v17 }
 0x605   :  { %4439 = vmatprep.subr.mxu0 %v4944_v5 }
 0x606   :  { %4440 = vmatpush3.msra.mxu0 %v5303_v18 }
 0x607   :  { %4441 = vmatprep.subr.mxu0 %v4944_v5 }
 0x608   :  { %4442 = vmatpush3.msra.mxu0 %v5307_v19 }
 0x609   :  { %4443 = vmatprep.subr.mxu0 %v4944_v5 }
 0x60a   :  { %4444 = vmatpush3.msra.mxu0 %v5311_v20 }
 0x60b   :  { %4445 = vmatprep.subr.mxu0 %v4944_v5 }
 0x60c   :  { %4446 = vmatpush3.msra.mxu0 %v5315_v21 }
 0x60d   :  { %4447 = vmatprep.subr.mxu0 %v4944_v5 }
 0x60e   :  { %4448 = vmatpush3.msra.mxu0 %v5319_v22 }
 0x60f   :  { %4450 = vmatmul.mubr.msk.f32.vlgmr.msra.gmra.mxu0 %vm210_vm2, %v5289_v15  ;;  %4471 = vmatprep.subr.mxu0 %v4944_v5 }
 0x610   :  { %4472 = vmatpush3.msra.mxu0 %v5287_v14  ;;  %4487 = vmatprep.mubr.msk.f32.mxu0 %vm4945_vm0, %v4944_v5 }
 0x611   :  { %4473 = vmatprep.subr.mxu0 %v4944_v5 }
 0x612   :  { %4474 = vmatpush3.msra.mxu0 %v5293_v16 }
 0x613   :  { %4475 = vmatprep.subr.mxu0 %v4944_v5 }
 0x614   :  { %4476 = vmatpush3.msra.mxu0 %v5299_v17 }
 0x615   :  { %4477 = vmatprep.subr.mxu0 %v4944_v5 }
 0x616   :  { %4478 = vmatpush3.msra.mxu0 %v5303_v18 }
 0x617   :  { %4479 = vmatprep.subr.mxu0 %v4944_v5 }
 0x618   :  { %4480 = vmatpush3.msra.mxu0 %v5307_v19 }
 0x619   :  { %4481 = vmatprep.subr.mxu0 %v4944_v5 }
 0x61a   :  { %4482 = vmatpush3.msra.mxu0 %v5311_v20 }
 0x61b   :  { %4483 = vmatprep.subr.mxu0 %v4944_v5 }
 0x61c   :  { %4484 = vmatpush3.msra.mxu0 %v5315_v21 }
 0x61d   :  { %4485 = vmatprep.subr.mxu0 %v4944_v5 }
 0x61e   :  { %4486 = vmatpush3.msra.mxu0 %v5319_v22 }
 0x61f   :  { %4509 = vmatprep.subr.mxu0 %v4944_v5 }
 0x65f   :  { %v730_v34 = vpop.f32.mrf.mxu0 }
 0x660   :  { %v734_v35 = vadd.f32 %v730_v34, %v208_v33 }
 0x661   :  { %v4185_v36 = vpop.f32.mrf.mxu0 }
 0x662   :  { %4824 = vtanh.f32 %v734_v35 }
 0x66f   :  { %v4825_v37 = vpop.eup %4824  ;;  %v5499_v38 = vpop.f32.mrf.mxu0 }
 0x670   :  { %4203 = vmatmul.mubr.msk.f32.vlgmr.msra.gmra.mxu1 %vm210_vm2, %v4825_v37  ;;  %4488 = vmatmul.mubr.msk.f32.vlgmr.msra.gmra.mxu0 %vm210_vm2, %v4825_v37 }
 0x671   :  { %v4223_v39 = vpop.f32.mrf.mxu0  ;;  %4225 = vmatpush3.msra.mxu1 %v5390_v23  ;;  %4240 = vmatprep.mubr.msk.f32.mxu1 %vm4945_vm0, %v4944_v5 }
 0x672   :  { %4226 = vmatprep.subr.mxu1 %v4944_v5  ;;  %4525 = vmatprep.mubr.msk.f32.mxu0 %vm4945_vm0, %v4944_v5 }
 0x673   :  { %4227 = vmatpush3.msra.mxu1 %v5396_v24  ;;  %4510 = vmatpush3.msra.mxu0 %v5599_v47 }
 0x674   :  { %4228 = vmatprep.subr.mxu1 %v4944_v5  ;;  %4511 = vmatprep.subr.mxu0 %v4944_v5 }
 0x675   :  { %4229 = vmatpush3.msra.mxu1 %v5398_v25  ;;  %4512 = vmatpush3.msra.mxu0 %v5604_v48 }
 0x676   :  { %4230 = vmatprep.subr.mxu1 %v4944_v5  ;;  %4513 = vmatprep.subr.mxu0 %v4944_v5 }
 0x677   :  { %4231 = vmatpush3.msra.mxu1 %v5404_v27  ;;  %4514 = vmatpush3.msra.mxu0 %v5610_v50 }
 0x678   :  { %4232 = vmatprep.subr.mxu1 %v4944_v5  ;;  %4515 = vmatprep.subr.mxu0 %v4944_v5 }
 0x679   :  { %4233 = vmatpush3.msra.mxu1 %v5410_v28  ;;  %4516 = vmatpush3.msra.mxu0 %v5616_v51 }
 0x67a   :  { %4234 = vmatprep.subr.mxu1 %v4944_v5  ;;  %4517 = vmatprep.subr.mxu0 %v4944_v5 }
 0x67b   :  { %4235 = vmatpush3.msra.mxu1 %v5416_v30  ;;  %4518 = vmatpush3.msra.mxu0 %v5622_v52 }
 0x67c   :  { %4236 = vmatprep.subr.mxu1 %v4944_v5  ;;  %4519 = vmatprep.subr.mxu0 %v4944_v5 }
 0x67d   :  { %4237 = vmatpush3.msra.mxu1 %v5422_v31  ;;  %4520 = vmatpush3.msra.mxu0 %v5628_v53 }
 0x67e   :  { %4238 = vmatprep.subr.mxu1 %v4944_v5  ;;  %4521 = vmatprep.subr.mxu0 %v4944_v5 }
 0x67f   :  { %4239 = vmatpush3.msra.mxu1 %v5432_v32  ;;  %v5522_v26 = vpop.f32.mrf.mxu0  ;;  %4522 = vmatpush3.msra.mxu0 %v5642_v57 }
 0x680   :  { %4241 = vmatmul.mubr.msk.f32.vlgmr.msra.gmra.mxu1 %vm210_vm2, %v5289_v15  ;;  %4262 = vmatprep.subr.mxu1 %v4944_v5 }
 0x681   :  { %v4261_v29 = vpop.f32.mrf.mxu0  ;;  %4263 = vmatpush3.msra.mxu1 %v5390_v23  ;;  %4278 = vmatprep.mubr.msk.f32.mxu1 %vm4945_vm0, %v4944_v5 }
 0x682   :  { %4264 = vmatprep.subr.mxu1 %v4944_v5  ;;  %4523 = vmatprep.subr.mxu0 %v4944_v5 }
 0x683   :  { %4265 = vmatpush3.msra.mxu1 %v5396_v24 }
 0x684   :  { %4266 = vmatprep.subr.mxu1 %v4944_v5 }
 0x685   :  { %4267 = vmatpush3.msra.mxu1 %v5398_v25 }
 0x686   :  { %4268 = vmatprep.subr.mxu1 %v4944_v5 }
 0x687   :  { %4269 = vmatpush3.msra.mxu1 %v5404_v27 }
 0x688   :  { %4270 = vmatprep.subr.mxu1 %v4944_v5 }
 0x689   :  { %4271 = vmatpush3.msra.mxu1 %v5410_v28 }
 0x68a   :  { %4272 = vmatprep.subr.mxu1 %v4944_v5 }
 0x68b   :  { %4273 = vmatpush3.msra.mxu1 %v5416_v30 }
 0x68c   :  { %4274 = vmatprep.subr.mxu1 %v4944_v5 }
 0x68d   :  { %4275 = vmatpush3.msra.mxu1 %v5422_v31 }
 0x68e   :  { %4276 = vmatprep.subr.mxu1 %v4944_v5 }
 0x68f   :  { %4277 = vmatpush3.msra.mxu1 %v5432_v32  ;;  %v5544_v40 = vpop.f32.mrf.mxu0 }
 0x690   :  { %4279 = vmatmul.mubr.msk.f32.vlgmr.msra.gmra.mxu1 %vm210_vm2, %v5276_v8  ;;  %4300 = vmatprep.subr.mxu1 %v4944_v5 }
 0x691   :  { %v4299_v42 = vpop.f32.mrf.mxu0  ;;  %4301 = vmatpush3.msra.mxu1 %v5390_v23  ;;  %4316 = vmatprep.mubr.msk.f32.mxu1 %vm4945_vm0, %v4944_v5 }
 0x692   :  { %4302 = vmatprep.subr.mxu1 %v4944_v5 }
 0x693   :  { %4303 = vmatpush3.msra.mxu1 %v5396_v24 }
 0x694   :  { %4304 = vmatprep.subr.mxu1 %v4944_v5 }
 0x695   :  { %4305 = vmatpush3.msra.mxu1 %v5398_v25 }
 0x696   :  { %4306 = vmatprep.subr.mxu1 %v4944_v5 }
 0x697   :  { %4307 = vmatpush3.msra.mxu1 %v5404_v27 }
 0x698   :  { %4308 = vmatprep.subr.mxu1 %v4944_v5 }
 0x699   :  { %4309 = vmatpush3.msra.mxu1 %v5410_v28 }
 0x69a   :  { %4310 = vmatprep.subr.mxu1 %v4944_v5 }
 0x69b   :  { %4311 = vmatpush3.msra.mxu1 %v5416_v30 }
 0x69c   :  { %4312 = vmatprep.subr.mxu1 %v4944_v5 }
 0x69d   :  { %4313 = vmatpush3.msra.mxu1 %v5422_v31 }
 0x69e   :  { %4314 = vmatprep.subr.mxu1 %v4944_v5 }
 0x69f   :  { %4315 = vmatpush3.msra.mxu1 %v5432_v32  ;;  %v5566_v43 = vpop.f32.mrf.mxu0 }
 0x6a0   :  { %4317 = vmatmul.mubr.msk.f32.vlgmr.msra.gmra.mxu1 %vm210_vm2, %v5252_v2  ;;  %4338 = vmatprep.subr.mxu1 %v4944_v5 }
 0x6a1   :  { %v4337_v44 = vpop.f32.mrf.mxu0  ;;  %4339 = vmatpush3.msra.mxu1 %v5390_v23  ;;  %4354 = vmatprep.mubr.msk.f32.mxu1 %vm4945_vm0, %v4944_v5 }
 0x6a2   :  { %4340 = vmatprep.subr.mxu1 %v4944_v5 }
 0x6a3   :  { %4341 = vmatpush3.msra.mxu1 %v5396_v24 }
 0x6a4   :  { %4342 = vmatprep.subr.mxu1 %v4944_v5 }
 0x6a5   :  { %4343 = vmatpush3.msra.mxu1 %v5398_v25 }
 0x6a6   :  { %4344 = vmatprep.subr.mxu1 %v4944_v5 }
 0x6a7   :  { %4345 = vmatpush3.msra.mxu1 %v5404_v27 }
 0x6a8   :  { %4346 = vmatprep.subr.mxu1 %v4944_v5 }
 0x6a9   :  { %4347 = vmatpush3.msra.mxu1 %v5410_v28 }
 0x6aa   :  { %4348 = vmatprep.subr.mxu1 %v4944_v5 }
 0x6ab   :  { %4349 = vmatpush3.msra.mxu1 %v5416_v30 }
 0x6ac   :  { %4350 = vmatprep.subr.mxu1 %v4944_v5 }
 0x6ad   :  { %4351 = vmatpush3.msra.mxu1 %v5422_v31 }
 0x6ae   :  { %4352 = vmatprep.subr.mxu1 %v4944_v5 }
 0x6af   :  { %4353 = vmatpush3.msra.mxu1 %v5432_v32  ;;  %v5588_v45 = vpop.f32.mrf.mxu0 }
 0x6b0   :  { %4355 = vmatmul.mubr.msk.f32.vlgmr.msra.gmra.mxu1 %vm210_vm2, %v5228_v61  ;;  %4376 = vmatprep.subr.mxu1 %v4944_v5 }
 0x6b1   :  { %v4375_v46 = vpop.f32.mrf.mxu0  ;;  %4377 = vmatpush3.msra.mxu1 %v5390_v23  ;;  %4392 = vmatprep.mubr.msk.f32.mxu1 %vm4945_vm0, %v4944_v5 }
 0x6b2   :  { %4378 = vmatprep.subr.mxu1 %v4944_v5 }
 0x6b3   :  { %4379 = vmatpush3.msra.mxu1 %v5396_v24 }
 0x6b4   :  { %4380 = vmatprep.subr.mxu1 %v4944_v5 }
 0x6b5   :  { %4381 = vmatpush3.msra.mxu1 %v5398_v25 }
 0x6b6   :  { %4382 = vmatprep.subr.mxu1 %v4944_v5 }
 0x6b7   :  { %4383 = vmatpush3.msra.mxu1 %v5404_v27 }
 0x6b8   :  { %4384 = vmatprep.subr.mxu1 %v4944_v5 }
 0x6b9   :  { %4385 = vmatpush3.msra.mxu1 %v5410_v28 }
 0x6ba   :  { %4386 = vmatprep.subr.mxu1 %v4944_v5 }
 0x6bb   :  { %4387 = vmatpush3.msra.mxu1 %v5416_v30 }
 0x6bc   :  { %4388 = vmatprep.subr.mxu1 %v4944_v5 }
 0x6bd   :  { %4389 = vmatpush3.msra.mxu1 %v5422_v31 }
 0x6be   :  { %4390 = vmatprep.subr.mxu1 %v4944_v5 }
 0x6bf   :  { %4391 = vmatpush3.msra.mxu1 %v5432_v32  ;;  %v5632_v54 = vpop.f32.mrf.mxu0 }
 0x6c0   :  { %4393 = vmatmul.mubr.msk.f32.vlgmr.msra.gmra.mxu1 %vm210_vm2, %v5201_v55  ;;  %4414 = vmatprep.subr.mxu1 %v4944_v5  ;;  %v5648_v55 = vld [vmem:[#allocation6] sm:$0xff] }
 0x6c1   :  { %v4413_v56 = vpop.f32.mrf.mxu0  ;;  %4415 = vmatpush3.msra.mxu1 %v5390_v23  ;;  %4430 = vmatprep.mubr.msk.f32.mxu1 %vm4945_vm0, %v4944_v5 }
 0x6c2   :  { %4416 = vmatprep.subr.mxu1 %v4944_v5  ;;  %4524 = vmatpush3.msra.mxu0 %v5648_v55 }
 0x6c3   :  { %4417 = vmatpush3.msra.mxu1 %v5396_v24  ;;  %4547 = vmatprep.subr.mxu0 %v4944_v5 }
 0x6c4   :  { %4418 = vmatprep.subr.mxu1 %v4944_v5 }
 0x6c5   :  { %4419 = vmatpush3.msra.mxu1 %v5398_v25 }
 0x6c6   :  { %4420 = vmatprep.subr.mxu1 %v4944_v5 }
 0x6c7   :  { %4421 = vmatpush3.msra.mxu1 %v5404_v27 }
 0x6c8   :  { %4422 = vmatprep.subr.mxu1 %v4944_v5 }
 0x6c9   :  { %4423 = vmatpush3.msra.mxu1 %v5410_v28 }
 0x6ca   :  { %4424 = vmatprep.subr.mxu1 %v4944_v5 }
 0x6cb   :  { %4425 = vmatpush3.msra.mxu1 %v5416_v30 }
 0x6cc   :  { %4426 = vmatprep.subr.mxu1 %v4944_v5 }
 0x6cd   :  { %4427 = vmatpush3.msra.mxu1 %v5422_v31 }
 0x6ce   :  { %4428 = vmatprep.subr.mxu1 %v4944_v5 }
 0x6cf   :  { %4429 = vmatpush3.msra.mxu1 %v5432_v32  ;;  %v5664_v58 = vpop.f32.mrf.mxu0 }
 0x6d0   :  { %4431 = vmatmul.mubr.msk.f32.vlgmr.msra.gmra.mxu1 %vm210_vm2, %v5176_v49  ;;  %4452 = vmatprep.subr.mxu1 %v4944_v5 }
 0x6d1   :  { %v4451_v59 = vpop.f32.mrf.mxu0  ;;  %4453 = vmatpush3.msra.mxu1 %v5390_v23  ;;  %4468 = vmatprep.mubr.msk.f32.mxu1 %vm4945_vm0, %v4944_v5 }
 0x6d2   :  { %4454 = vmatprep.subr.mxu1 %v4944_v5 }
 0x6d3   :  { %4455 = vmatpush3.msra.mxu1 %v5396_v24 }
 0x6d4   :  { %4456 = vmatprep.subr.mxu1 %v4944_v5 }
 0x6d5   :  { %4457 = vmatpush3.msra.mxu1 %v5398_v25 }
 0x6d6   :  { %4458 = vmatprep.subr.mxu1 %v4944_v5 }
 0x6d7   :  { %4459 = vmatpush3.msra.mxu1 %v5404_v27 }
 0x6d8   :  { %4460 = vmatprep.subr.mxu1 %v4944_v5 }
 0x6d9   :  { %4461 = vmatpush3.msra.mxu1 %v5410_v28 }
 0x6da   :  { %4462 = vmatprep.subr.mxu1 %v4944_v5 }
 0x6db   :  { %4463 = vmatpush3.msra.mxu1 %v5416_v30 }
 0x6dc   :  { %4464 = vmatprep.subr.mxu1 %v4944_v5 }
 0x6dd   :  { %4465 = vmatpush3.msra.mxu1 %v5422_v31 }
 0x6de   :  { %4466 = vmatprep.subr.mxu1 %v4944_v5 }
 0x6df   :  { %4467 = vmatpush3.msra.mxu1 %v5432_v32 }
 0x6e0   :  { %4469 = vmatmul.mubr.msk.f32.vlgmr.msra.gmra.mxu1 %vm210_vm2, %v5145_v41  ;;  %4490 = vmatprep.subr.mxu1 %v4944_v5  ;;  %v5710_v41 = vld [vmem:[%s6176_s6] ss:$0 sm:$0xff] }
 0x6e1   :  { %4491 = vmatpush3.msra.mxu1 %v5599_v47  ;;  %4506 = vmatprep.mubr.msk.f32.mxu1 %vm4945_vm0, %v4944_v5 }
 0x6e2   :  { %4492 = vmatprep.subr.mxu1 %v4944_v5 }
 0x6e3   :  { %4493 = vmatpush3.msra.mxu1 %v5604_v48 }
 0x6e4   :  { %4494 = vmatprep.subr.mxu1 %v4944_v5 }
 0x6e5   :  { %4495 = vmatpush3.msra.mxu1 %v5610_v50 }
 0x6e6   :  { %4496 = vmatprep.subr.mxu1 %v4944_v5 }
 0x6e7   :  { %4497 = vmatpush3.msra.mxu1 %v5616_v51 }
 0x6e8   :  { %4498 = vmatprep.subr.mxu1 %v4944_v5 }
 0x6e9   :  { %4499 = vmatpush3.msra.mxu1 %v5622_v52 }
 0x6ea   :  { %4500 = vmatprep.subr.mxu1 %v4944_v5 }
 0x6eb   :  { %4501 = vmatpush3.msra.mxu1 %v5628_v53 }
 0x6ec   :  { %4502 = vmatprep.subr.mxu1 %v4944_v5 }
 0x6ed   :  { %4503 = vmatpush3.msra.mxu1 %v5642_v57 }
 0x6ee   :  { %4504 = vmatprep.subr.mxu1 %v4944_v5 }
 0x6ef   :  { %4505 = vmatpush3.msra.mxu1 %v5648_v55 }
 0x6f0   :  { %4528 = vmatprep.subr.mxu1 %v4944_v5 }
 0x730   :  { %v805_v49 = vpop.f32.mrf.mxu1  ;;  %v5712_v60 = vpop.f32.mrf.mxu0 }
 0x731   :  { %v876_v61 = vadd.f32 %v5499_v38, %v805_v49  ;;  %v5888_v49 = vld [vmem:[%s6178_s8] sm:$0xff] }
 0x732   :  { %v4204_v62 = vpop.f32.mrf.mxu1  ;;  %v4489_v63 = vpop.f32.mrf.mxu0 }
 0x733   :  { %v885_v0 = vadd.f32 %v5710_v41, %v876_v61 }
 0x735   :  { %4826 = vtanh.f32 %v885_v0 }
 0x740   :  { %v952_v1 = vpop.f32.mrf.mxu1 }
 0x741   :  { %v1023_v17 = vadd.f32 %v5522_v26, %v952_v1 }
 0x742   :  { %v5716_v2 = vpop.eup %4826  ;;  %v4242_v3 = vpop.f32.mrf.mxu1 }
 0x743   :  { %4507 = vmatmul.mubr.msk.f32.vlgmr.msra.gmra.mxu1 %vm210_vm2, %v5716_v2  ;;  %v1026_v18 = vadd.f32 %v5710_v41, %v1023_v17  ;;  %v2399_v61 = vmax.f32 %v5716_v2, 0.0  ;;  %v5987_v2 = vld [vmem:[%s6178_s8 + $0x38] sm:$0xff]  ;;  %v5992_v3 = vld [vmem:[%s6178_s8 + $0x30] sm:$0xff] }
 0x744   :  { %4529 = vmatpush3.msra.mxu1 %v5599_v47  ;;  %4544 = vmatprep.mubr.msk.f32.mxu1 %vm4945_vm0, %v4944_v5 }
 0x745   :  { %4530 = vmatprep.subr.mxu1 %v4944_v5 }
 0x746   :  { %4531 = vmatpush3.msra.mxu1 %v5604_v48 }
 0x747   :  { %4532 = vmatprep.subr.mxu1 %v4944_v5 }
 0x748   :  { %4533 = vmatpush3.msra.mxu1 %v5610_v50 }
 0x749   :  { %4534 = vmatprep.subr.mxu1 %v4944_v5 }
 0x74a   :  { %4535 = vmatpush3.msra.mxu1 %v5616_v51 }
 0x74b   :  { %4536 = vmatprep.subr.mxu1 %v4944_v5 }
 0x74c   :  { %4537 = vmatpush3.msra.mxu1 %v5622_v52 }
 0x74d   :  { %4538 = vmatprep.subr.mxu1 %v4944_v5 }
 0x74e   :  { %4539 = vmatpush3.msra.mxu1 %v5628_v53 }
 0x74f   :  { %4540 = vmatprep.subr.mxu1 %v4944_v5 }
 0x750   :  { %v1093_v4 = vpop.f32.mrf.mxu1  ;;  %4541 = vmatpush3.msra.mxu1 %v5642_v57 }
 0x751   :  { %4542 = vmatprep.subr.mxu1 %v4944_v5  ;;  %v1164_v23 = vadd.f32 %v5544_v40, %v1093_v4  ;;  %v5999_v4 = vld [vmem:[%s6178_s8 + $0x28] sm:$0xff] }
 0x752   :  { %v4280_v6 = vpop.f32.mrf.mxu1  ;;  %4543 = vmatpush3.msra.mxu1 %v5648_v55 }
 0x753   :  { %4566 = vmatprep.subr.mxu1 %v4944_v5  ;;  %v1167_v24 = vadd.f32 %v5710_v41, %v1164_v23  ;;  %v6006_v6 = vld [vmem:[%s6178_s8 + $0x20] sm:$0xff] }
 0x760   :  { %v1234_v7 = vpop.f32.mrf.mxu1 }
 0x761   :  { %v1305_v31 = vadd.f32 %v5566_v43, %v1234_v7 }
 0x762   :  { %v4318_v8 = vpop.f32.mrf.mxu1 }
 0x763   :  { %v1308_v32 = vadd.f32 %v5710_v41, %v1305_v31 }
 0x770   :  { %v5738_v9 = vpop.f32.mrf.mxu1 }
 0x771   :  { %v1446_v37 = vadd.f32 %v5588_v45, %v5738_v9 }
 0x772   :  { %v4356_v10 = vpop.f32.mrf.mxu1 }
 0x773   :  { %v1449_v38 = vadd.f32 %v5710_v41, %v1446_v37 }
 0x780   :  { %v5740_v11 = vpop.f32.mrf.mxu1 }
 0x781   :  { %v1587_v42 = vadd.f32 %v5632_v54, %v5740_v11  ;;  %v5858_v54 = vld [vmem:[%s6178_s8 + $0x18] sm:$0xff] }
 0x782   :  { %v4394_v12 = vpop.f32.mrf.mxu1 }
 0x783   :  { %v1590_v43 = vadd.f32 %v5710_v41, %v1587_v42 }
 0x790   :  { %v5742_v13 = vpop.f32.mrf.mxu1 }
 0x792   :  { %v4432_v14 = vpop.f32.mrf.mxu1 }
 0x7a0   :  { %v5744_v15 = vpop.f32.mrf.mxu1 }
 0x7a1   :  { %v1869_v7 = vadd.f32 %v5712_v60, %v5744_v15 }
 0x7a2   :  { %v4470_v16 = vpop.f32.mrf.mxu1 }
 0x7a3   :  { %v1872_v8 = vadd.f32 %v5710_v41, %v1869_v7 }
 0x803   :  { %v1943_v19 = vpop.f32.mrf.mxu1 }
 0x804   :  { %v1947_v20 = vadd.f32 %v1943_v19, %v1026_v18 }
 0x805   :  { %v4508_v21 = vpop.f32.mrf.mxu1 }
 0x806   :  { %4828 = vtanh.f32 %v1947_v20 }
 0x813   :  { %v5748_v22 = vpop.eup %4828 }
 0x814   :  { %4526 = vmatmul.mubr.msk.f32.vlgmr.msra.gmra.mxu0 %vm210_vm2, %v5748_v22  ;;  %v2562_v63 = vmax.f32 %v5748_v22, 0.0 }
 0x815   :  { %4548 = vmatpush3.msra.mxu0 %v5599_v47  ;;  %4563 = vmatprep.mubr.msk.f32.mxu0 %vm4945_vm0, %v4944_v5 }
 0x816   :  { %4549 = vmatprep.subr.mxu0 %v4944_v5 }
 0x817   :  { %4550 = vmatpush3.msra.mxu0 %v5604_v48 }
 0x818   :  { %4551 = vmatprep.subr.mxu0 %v4944_v5 }
 0x819   :  { %4552 = vmatpush3.msra.mxu0 %v5610_v50 }
 0x81a   :  { %4553 = vmatprep.subr.mxu0 %v4944_v5 }
 0x81b   :  { %4554 = vmatpush3.msra.mxu0 %v5616_v51 }
 0x81c   :  { %4555 = vmatprep.subr.mxu0 %v4944_v5 }
 0x81d   :  { %4556 = vmatpush3.msra.mxu0 %v5622_v52 }
 0x81e   :  { %4557 = vmatprep.subr.mxu0 %v4944_v5 }
 0x81f   :  { %4558 = vmatpush3.msra.mxu0 %v5628_v53 }
 0x820   :  { %4559 = vmatprep.subr.mxu0 %v4944_v5 }
 0x821   :  { %4560 = vmatpush3.msra.mxu0 %v5642_v57 }
 0x822   :  { %4561 = vmatprep.subr.mxu0 %v4944_v5 }
 0x823   :  { %4562 = vmatpush3.msra.mxu0 %v5648_v55 }
 0x824   :  { %4585 = vmatprep.subr.mxu0 %v4944_v5 }
 0x8d4   :  { %v2018_v25 = vpop.f32.mrf.mxu0 }
 0x8d5   :  { %v2022_v27 = vadd.f32 %v2018_v25, %v1167_v24 }
 0x8d6   :  { %v4527_v28 = vpop.f32.mrf.mxu0 }
 0x8d7   :  { %4830 = vtanh.f32 %v2022_v27 }
 0x8e4   :  { %v5772_v30 = vpop.eup %4830 }
 0x8e5   :  { %4545 = vmatmul.mubr.msk.f32.vlgmr.msra.gmra.mxu1 %vm210_vm2, %v5772_v30  ;;  %v2718_v62 = vmax.f32 %v5772_v30, 0.0 }
 0x8e6   :  { %4567 = vmatpush3.msra.mxu1 %v5599_v47  ;;  %4582 = vmatprep.mubr.msk.f32.mxu1 %vm4945_vm0, %v4944_v5 }
 0x8e7   :  { %4568 = vmatprep.subr.mxu1 %v4944_v5 }
 0x8e8   :  { %4569 = vmatpush3.msra.mxu1 %v5604_v48 }
 0x8e9   :  { %4570 = vmatprep.subr.mxu1 %v4944_v5 }
 0x8ea   :  { %4571 = vmatpush3.msra.mxu1 %v5610_v50 }
 0x8eb   :  { %4572 = vmatprep.subr.mxu1 %v4944_v5 }
 0x8ec   :  { %4573 = vmatpush3.msra.mxu1 %v5616_v51 }
 0x8ed   :  { %4574 = vmatprep.subr.mxu1 %v4944_v5 }
 0x8ee   :  { %4575 = vmatpush3.msra.mxu1 %v5622_v52 }
 0x8ef   :  { %4576 = vmatprep.subr.mxu1 %v4944_v5 }
 0x8f0   :  { %4577 = vmatpush3.msra.mxu1 %v5628_v53 }
 0x8f1   :  { %4578 = vmatprep.subr.mxu1 %v4944_v5 }
 0x8f2   :  { %4579 = vmatpush3.msra.mxu1 %v5642_v57 }
 0x8f3   :  { %4580 = vmatprep.subr.mxu1 %v4944_v5 }
 0x8f4   :  { %4581 = vmatpush3.msra.mxu1 %v5648_v55 }
 0x8f5   :  { %4604 = vmatprep.subr.mxu1 %v4944_v5 }
 0x9a5   :  { %v2093_v33 = vpop.f32.mrf.mxu1 }
 0x9a6   :  { %v2097_v34 = vadd.f32 %v2093_v33, %v1308_v32 }
 0x9a7   :  { %v4546_v35 = vpop.f32.mrf.mxu1 }
 0x9a8   :  { %4832 = vtanh.f32 %v2097_v34 }
 0x9b5   :  { %v5796_v36 = vpop.eup %4832 }
 0x9b6   :  { %4564 = vmatmul.mubr.msk.f32.vlgmr.msra.gmra.mxu0 %vm210_vm2, %v5796_v36  ;;  %v2874_v0 = vmax.f32 %v5796_v36, 0.0 }
 0x9b7   :  { %4586 = vmatpush3.msra.mxu0 %v5599_v47  ;;  %4601 = vmatprep.mubr.msk.f32.mxu0 %vm4945_vm0, %v4944_v5 }
 0x9b8   :  { %4587 = vmatprep.subr.mxu0 %v4944_v5 }
 0x9b9   :  { %4588 = vmatpush3.msra.mxu0 %v5604_v48 }
 0x9ba   :  { %4589 = vmatprep.subr.mxu0 %v4944_v5 }
 0x9bb   :  { %4590 = vmatpush3.msra.mxu0 %v5610_v50 }
 0x9bc   :  { %4591 = vmatprep.subr.mxu0 %v4944_v5 }
 0x9bd   :  { %4592 = vmatpush3.msra.mxu0 %v5616_v51 }
 0x9be   :  { %4593 = vmatprep.subr.mxu0 %v4944_v5 }
 0x9bf   :  { %4594 = vmatpush3.msra.mxu0 %v5622_v52 }
 0x9c0   :  { %4595 = vmatprep.subr.mxu0 %v4944_v5 }
 0x9c1   :  { %4596 = vmatpush3.msra.mxu0 %v5628_v53 }
 0x9c2   :  { %4597 = vmatprep.subr.mxu0 %v4944_v5 }
 0x9c3   :  { %4598 = vmatpush3.msra.mxu0 %v5642_v57 }
 0x9c4   :  { %4599 = vmatprep.subr.mxu0 %v4944_v5 }
 0x9c5   :  { %4600 = vmatpush3.msra.mxu0 %v5648_v55 }
 0x9c6   :  { %4623 = vmatprep.subr.mxu0 %v4944_v5 }
 0xa76   :  { %v2168_v39 = vpop.f32.mrf.mxu0 }
 0xa77   :  { %v2172_v26 = vadd.f32 %v2168_v39, %v1449_v38  ;;  %v6120_v38 = vld [vmem:[%s6179_s9] ss:$0 sm:$0xff] }
 0xa78   :  { %v4565_v29 = vpop.f32.mrf.mxu0 }
 0xa79   :  { %4834 = vtanh.f32 %v2172_v26 }
 0xa86   :  { %v5821_v40 = vpop.eup %4834 }
 0xa87   :  { %4583 = vmatmul.mubr.msk.f32.vlgmr.msra.gmra.mxu1 %vm210_vm2, %v5821_v40  ;;  %v2875_v59 = vmax.f32 %v5821_v40, 0.0 }
 0xa88   :  { %4605 = vmatpush3.msra.mxu1 %v5599_v47  ;;  %4620 = vmatprep.mubr.msk.f32.mxu1 %vm4945_vm0, %v4944_v5 }
 0xa89   :  { %4606 = vmatprep.subr.mxu1 %v4944_v5 }
 0xa8a   :  { %4607 = vmatpush3.msra.mxu1 %v5604_v48  ;;  %v1728_v48 = vadd.f32 %v5664_v58, %v5742_v13  ;;  %v5880_v58 = vld [vmem:[%s6178_s8 + $0x8] sm:$0xff] }
 0xa8b   :  { %4608 = vmatprep.subr.mxu1 %v4944_v5 }
 0xa8c   :  { %4609 = vmatpush3.msra.mxu1 %v5610_v50  ;;  %v1731_v50 = vadd.f32 %v5710_v41, %v1728_v48 }
 0xa8d   :  { %4610 = vmatprep.subr.mxu1 %v4944_v5 }
 0xa8e   :  { %4611 = vmatpush3.msra.mxu1 %v5616_v51 }
 0xa8f   :  { %4612 = vmatprep.subr.mxu1 %v4944_v5 }
 0xa90   :  { %4613 = vmatpush3.msra.mxu1 %v5622_v52 }
 0xa91   :  { %4614 = vmatprep.subr.mxu1 %v4944_v5 }
 0xa92   :  { %4615 = vmatpush3.msra.mxu1 %v5628_v53 }
 0xa93   :  { %4616 = vmatprep.subr.mxu1 %v4944_v5 }
 0xa94   :  { %4617 = vmatpush3.msra.mxu1 %v5642_v57 }
 0xa95   :  { %4618 = vmatprep.subr.mxu1 %v4944_v5 }
 0xa96   :  { %4619 = vmatpush3.msra.mxu1 %v5648_v55  ;;  %v5868_v55 = vld [vmem:[%s6178_s8 + $0x10] sm:$0xff] }
 0xa97   :  { %4634 = vmatprep.subr.mxu1 %v4944_v5 }
 0xb47   :  { %v2243_v44 = vpop.f32.mrf.mxu1 }
 0xb48   :  { %v2247_v45 = vadd.f32 %v2243_v44, %v1590_v43 }
 0xb49   :  { %v4584_v46 = vpop.f32.mrf.mxu1 }
 0xb4a   :  { %4836 = vtanh.f32 %v2247_v45 }
 0xb57   :  { %v5846_v47 = vpop.eup %4836 }
 0xb58   :  { %4602 = vmatmul.mubr.msk.f32.vlgmr.msra.gmra.mxu0 %vm210_vm2, %v5846_v47  ;;  %v2719_v1 = vmax.f32 %v5846_v47, 0.0 }
 0xb59   :  { %4631 = vmatprep.mubr.msk.f32.mxu0 %vm4945_vm0, %v4944_v5  ;;  %4624 = vmatpush3.msra.mxu0 %v5987_v2 }
 0xb5a   :  { %4625 = vmatprep.subr.mxu0 %v4944_v5 }
 0xb5b   :  { %4626 = vmatpush3.msra.mxu0 %v5992_v3 }
 0xb5c   :  { %4627 = vmatprep.subr.mxu0 %v4944_v5 }
 0xb5d   :  { %4628 = vmatpush3.msra.mxu0 %v5999_v4 }
 0xb5e   :  { %4629 = vmatprep.subr.mxu0 %v4944_v5 }
 0xb5f   :  { %4630 = vmatpush3.msra.mxu0 %v6006_v6 }
 0xb60   :  { %4645 = vmatprep.subr.mxu0 %v4944_v5 }
 0xc18   :  { %v2318_v51 = vpop.f32.mrf.mxu0 }
 0xc19   :  { %v2322_v52 = vadd.f32 %v2318_v51, %v1731_v50 }
 0xc1a   :  { %v4603_v53 = vpop.f32.mrf.mxu0 }
 0xc1b   :  { %4838 = vtanh.f32 %v2322_v52 }
 0xc28   :  { %v5860_v56 = vpop.eup %4838 }
 0xc29   :  { %4621 = vmatmul.mubr.msk.f32.vlgmr.msra.gmra.mxu1 %vm210_vm2, %v5860_v56  ;;  %v2563_v57 = vmax.f32 %v5860_v56, 0.0 }
 0xc2a   :  { %4635 = vmatpush3.msra.mxu1 %v5858_v54  ;;  %4642 = vmatprep.mubr.msk.f32.mxu1 %vm4945_vm0, %v4944_v5 }
 0xc2b   :  { %4636 = vmatprep.subr.mxu1 %v4944_v5  ;;  %2565 = vrot.lane.b32.xlu1 %v2563_v57, %s4946_s21 }
 0xc2c   :  { %4637 = vmatpush3.msra.mxu1 %v5868_v55 }
 0xc2d   :  { %4638 = vmatprep.subr.mxu1 %v4944_v5 }
 0xc2e   :  { %4639 = vmatpush3.msra.mxu1 %v5880_v58 }
 0xc2f   :  { %4640 = vmatprep.subr.mxu1 %v4944_v5  ;;  %2877 = vrot.lane.b32.xlu1 %v2875_v59, %s4946_s21 }
 0xc30   :  { %4641 = vmatpush3.msra.mxu1 %v5888_v49 }
 0xc31   :  { %4643 = vmatmul.mubr.msk.f32.vlgmr.msra.gmra.mxu1 %vm2404_vm3, %v2399_v61  ;;  %4656 = vmatprep.subr.mxu1 %v4944_v5 }
 0xc32   :  { %4657 = vmatpush3.msra.mxu1 %v5858_v54  ;;  %4664 = vmatprep.mubr.msk.f32.mxu1 %vm4945_vm0, %v4944_v5 }
 0xc33   :  { %4658 = vmatprep.subr.mxu1 %v4944_v5  ;;  %3182 = vrot.lane.b32.xlu1 %v2718_v62, %s4946_s21 }
 0xc34   :  { %4659 = vmatpush3.msra.mxu1 %v5868_v55 }
 0xc35   :  { %4660 = vmatprep.subr.mxu1 %v4944_v5 }
 0xc36   :  { %4661 = vmatpush3.msra.mxu1 %v5880_v58 }
 0xc37   :  { %4662 = vmatprep.subr.mxu1 %v4944_v5  ;;  %3486 = vrot.lane.b32.xlu1 %v2399_v61, %s4946_s21 }
 0xc38   :  { %4663 = vmatpush3.msra.mxu1 %v5888_v49 }
 0xc39   :  { %4665 = vmatmul.mubr.msk.f32.vlgmr.msra.gmra.mxu1 %vm2404_vm3, %v2562_v63  ;;  %4678 = vmatprep.subr.mxu1 %v4944_v5 }
 0xc3a   :  { %4679 = vmatpush3.msra.mxu1 %v5858_v54  ;;  %4686 = vmatprep.mubr.msk.f32.mxu1 %vm4945_vm0, %v4944_v5 }
 0xc3b   :  { %4680 = vmatprep.subr.mxu1 %v4944_v5 }
 0xc3c   :  { %4681 = vmatpush3.msra.mxu1 %v5868_v55 }
 0xc3d   :  { %4682 = vmatprep.subr.mxu1 %v4944_v5 }
 0xc3e   :  { %4683 = vmatpush3.msra.mxu1 %v5880_v58 }
 0xc3f   :  { %4684 = vmatprep.subr.mxu1 %v4944_v5 }
 0xc40   :  { %4685 = vmatpush3.msra.mxu1 %v5888_v49 }
 0xc41   :  { %4687 = vmatmul.mubr.msk.f32.vlgmr.msra.gmra.mxu1 %vm2404_vm3, %v2718_v62  ;;  %4700 = vmatprep.subr.mxu1 %v4944_v5 }
 0xc42   :  { %4701 = vmatpush3.msra.mxu1 %v5858_v54  ;;  %4708 = vmatprep.mubr.msk.f32.mxu1 %vm4945_vm0, %v4944_v5 }
 0xc43   :  { %4702 = vmatprep.subr.mxu1 %v4944_v5 }
 0xc44   :  { %4703 = vmatpush3.msra.mxu1 %v5868_v55 }
 0xc45   :  { %4704 = vmatprep.subr.mxu1 %v4944_v5 }
 0xc46   :  { %4705 = vmatpush3.msra.mxu1 %v5880_v58 }
 0xc47   :  { %4706 = vmatprep.subr.mxu1 %v4944_v5 }
 0xc48   :  { %4707 = vmatpush3.msra.mxu1 %v5888_v49 }
 0xc49   :  { %4709 = vmatmul.mubr.msk.f32.vlgmr.msra.gmra.mxu1 %vm2404_vm3, %v2874_v0  ;;  %4722 = vmatprep.subr.mxu1 %v4944_v5 }
 0xc4a   :  { %4723 = vmatpush3.msra.mxu1 %v5858_v54  ;;  %4730 = vmatprep.mubr.msk.f32.mxu1 %vm4945_vm0, %v4944_v5 }
 0xc4b   :  { %4724 = vmatprep.subr.mxu1 %v4944_v5 }
 0xc4c   :  { %4725 = vmatpush3.msra.mxu1 %v5868_v55 }
 0xc4d   :  { %4726 = vmatprep.subr.mxu1 %v4944_v5 }
 0xc4e   :  { %4727 = vmatpush3.msra.mxu1 %v5880_v58 }
 0xc4f   :  { %4728 = vmatprep.subr.mxu1 %v4944_v5 }
 0xc50   :  { %4729 = vmatpush3.msra.mxu1 %v5888_v49 }
 0xc51   :  { %4731 = vmatmul.mubr.msk.f32.vlgmr.msra.gmra.mxu1 %vm2404_vm3, %v2875_v59  ;;  %4744 = vmatprep.subr.mxu1 %v4944_v5 }
 0xc52   :  { %4745 = vmatpush3.msra.mxu1 %v5858_v54  ;;  %4752 = vmatprep.mubr.msk.f32.mxu1 %vm4945_vm0, %v4944_v5 }
 0xc53   :  { %4746 = vmatprep.subr.mxu1 %v4944_v5 }
 0xc54   :  { %4747 = vmatpush3.msra.mxu1 %v5868_v55 }
 0xc55   :  { %4748 = vmatprep.subr.mxu1 %v4944_v5 }
 0xc56   :  { %4749 = vmatpush3.msra.mxu1 %v5880_v58 }
 0xc57   :  { %4750 = vmatprep.subr.mxu1 %v4944_v5 }
 0xc58   :  { %4751 = vmatpush3.msra.mxu1 %v5888_v49 }
 0xc59   :  { %4753 = vmatmul.mubr.msk.f32.vlgmr.msra.gmra.mxu1 %vm2404_vm3, %v2719_v1  ;;  %4766 = vmatprep.subr.mxu1 %v4944_v5 }
 0xc5a   :  { %4767 = vmatpush3.msra.mxu1 %v5858_v54  ;;  %4774 = vmatprep.mubr.msk.f32.mxu1 %vm4945_vm0, %v4944_v5 }
 0xc5b   :  { %4768 = vmatprep.subr.mxu1 %v4944_v5 }
 0xc5c   :  { %4769 = vmatpush3.msra.mxu1 %v5868_v55 }
 0xc5d   :  { %4770 = vmatprep.subr.mxu1 %v4944_v5 }
 0xc5e   :  { %4771 = vmatpush3.msra.mxu1 %v5880_v58 }
 0xc5f   :  { %4772 = vmatprep.subr.mxu1 %v4944_v5 }
 0xc60   :  { %4773 = vmatpush3.msra.mxu1 %v5888_v49 }
 0xc61   :  { %4775 = vmatmul.mubr.msk.f32.vlgmr.msra.gmra.mxu1 %vm2404_vm3, %v2563_v57  ;;  %4788 = vmatprep.subr.mxu1 %v4944_v5 }
 0xc62   :  { %4789 = vmatpush3.msra.mxu1 %v5858_v54  ;;  %4796 = vmatprep.mubr.msk.f32.mxu1 %vm4945_vm0, %v4944_v5 }
 0xc63   :  { %4790 = vmatprep.subr.mxu1 %v4944_v5 }
 0xc64   :  { %4791 = vmatpush3.msra.mxu1 %v5868_v55 }
 0xc65   :  { %4792 = vmatprep.subr.mxu1 %v4944_v5 }
 0xc66   :  { %4793 = vmatpush3.msra.mxu1 %v5880_v58 }
 0xc67   :  { %4794 = vmatprep.subr.mxu1 %v4944_v5 }
 0xc68   :  { %4795 = vmatpush3.msra.mxu1 %v5888_v49 }
 0xc9d   :  { %v2566_v22 = vpop.permute.xlu1 %2565 }
 0xca1   :  { %v2878_v31 = vpop.permute.xlu1 %2877 }
 0xca5   :  { %v3183_v33 = vpop.permute.xlu1 %3182 }
 0xca9   :  { %v3487_v35 = vpop.permute.xlu1 %3486 }
 0xce9   :  { %v2393_v9 = vpop.f32.mrf.mxu1 }
 0xcea   :  { %v2397_v10 = vadd.f32 %v2393_v9, %v1872_v8 }
 0xceb   :  { %v4622_v11 = vpop.f32.mrf.mxu1 }
 0xcec   :  { %4840 = vtanh.f32 %v2397_v10 }
 0xcf1   :  { %v6015_v12 = vpop.f32.mrf.mxu1 }
 0xcf3   :  { %v4644_v13 = vpop.f32.mrf.mxu1 }
 0xcf9   :  { %v4841_v14 = vpop.eup %4840  ;;  %v6017_v16 = vpop.f32.mrf.mxu1 }
 0xcfa   :  { %v2400_v17 = vmax.f32 %v4841_v14, 0.0 }
 0xcfb   :  { %v4666_v18 = vpop.f32.mrf.mxu1 }
 0xcfc   :  { %2402 = vrot.lane.b32.xlu0 %v2400_v17, %s4946_s21  ;;  %4797 = vmatmul.mubr.msk.f32.vlgmr.msra.gmra.mxu1 %vm2404_vm3, %v2400_v17 }
 0xd00   :  { %2721 = vrot.lane.b32.xlu0 %v2719_v1, %s4946_s21 }
 0xd01   :  { %v6022_v60 = vpop.f32.mrf.mxu1 }
 0xd03   :  { %v4688_v41 = vpop.f32.mrf.mxu1 }
 0xd04   :  { %3030 = vrot.lane.b32.xlu0 %v2874_v0, %s4946_s21 }
 0xd08   :  { %3334 = vrot.lane.b32.xlu0 %v2562_v63, %s4946_s21 }
 0xd09   :  { %v6030_v15 = vpop.f32.mrf.mxu1 }
 0xd0b   :  { %v4710_v19 = vpop.f32.mrf.mxu1 }
 0xd11   :  { %v6032_v20 = vpop.f32.mrf.mxu1 }
 0xd13   :  { %v4732_v21 = vpop.f32.mrf.mxu1 }
 0xd19   :  { %v6034_v23 = vpop.f32.mrf.mxu1 }
 0xd1b   :  { %v4754_v24 = vpop.f32.mrf.mxu1 }
 0xd21   :  { %v6036_v25 = vpop.f32.mrf.mxu1 }
 0xd23   :  { %v4776_v27 = vpop.f32.mrf.mxu1 }
 0xd6e   :  { %v2403_v28 = vpop.permute.xlu0 %2402 }
 0xd6f   :  { %4632 = vmatmul.mubr.msk.f32.vlgmr.msra.gmra.mxu0 %vm2404_vm3, %v2403_v28 }
 0xd70   :  { %4646 = vmatpush3.msra.mxu0 %v5987_v2  ;;  %4653 = vmatprep.mubr.msk.f32.mxu0 %vm4945_vm0, %v4944_v5 }
 0xd71   :  { %4647 = vmatprep.subr.mxu0 %v4944_v5 }
 0xd72   :  { %4648 = vmatpush3.msra.mxu0 %v5992_v3  ;;  %v2722_v30 = vpop.permute.xlu0 %2721 }
 0xd73   :  { %4649 = vmatprep.subr.mxu0 %v4944_v5 }
 0xd74   :  { %4650 = vmatpush3.msra.mxu0 %v5999_v4 }
 0xd75   :  { %4651 = vmatprep.subr.mxu0 %v4944_v5 }
 0xd76   :  { %4652 = vmatpush3.msra.mxu0 %v6006_v6  ;;  %v3031_v32 = vpop.permute.xlu0 %3030 }
 0xd77   :  { %4654 = vmatmul.mubr.msk.f32.vlgmr.msra.gmra.mxu0 %vm2404_vm3, %v2566_v22  ;;  %4667 = vmatprep.subr.mxu0 %v4944_v5 }
 0xd78   :  { %4668 = vmatpush3.msra.mxu0 %v5987_v2  ;;  %4675 = vmatprep.mubr.msk.f32.mxu0 %vm4945_vm0, %v4944_v5 }
 0xd79   :  { %4669 = vmatprep.subr.mxu0 %v4944_v5 }
 0xd7a   :  { %4670 = vmatpush3.msra.mxu0 %v5992_v3  ;;  %v3335_v34 = vpop.permute.xlu0 %3334 }
 0xd7b   :  { %4671 = vmatprep.subr.mxu0 %v4944_v5 }
 0xd7c   :  { %4672 = vmatpush3.msra.mxu0 %v5999_v4 }
 0xd7d   :  { %4673 = vmatprep.subr.mxu0 %v4944_v5 }
 0xd7e   :  { %4674 = vmatpush3.msra.mxu0 %v6006_v6 }
 0xd7f   :  { %4676 = vmatmul.mubr.msk.f32.vlgmr.msra.gmra.mxu0 %vm2404_vm3, %v2722_v30  ;;  %4689 = vmatprep.subr.mxu0 %v4944_v5 }
 0xd80   :  { %4690 = vmatpush3.msra.mxu0 %v5987_v2  ;;  %4697 = vmatprep.mubr.msk.f32.mxu0 %vm4945_vm0, %v4944_v5 }
 0xd81   :  { %4691 = vmatprep.subr.mxu0 %v4944_v5 }
 0xd82   :  { %4692 = vmatpush3.msra.mxu0 %v5992_v3 }
 0xd83   :  { %4693 = vmatprep.subr.mxu0 %v4944_v5 }
 0xd84   :  { %4694 = vmatpush3.msra.mxu0 %v5999_v4 }
 0xd85   :  { %4695 = vmatprep.subr.mxu0 %v4944_v5 }
 0xd86   :  { %4696 = vmatpush3.msra.mxu0 %v6006_v6 }
 0xd87   :  { %4698 = vmatmul.mubr.msk.f32.vlgmr.msra.gmra.mxu0 %vm2404_vm3, %v2878_v31  ;;  %4711 = vmatprep.subr.mxu0 %v4944_v5 }
 0xd88   :  { %4712 = vmatpush3.msra.mxu0 %v5987_v2  ;;  %4719 = vmatprep.mubr.msk.f32.mxu0 %vm4945_vm0, %v4944_v5 }
 0xd89   :  { %4713 = vmatprep.subr.mxu0 %v4944_v5 }
 0xd8a   :  { %4714 = vmatpush3.msra.mxu0 %v5992_v3 }
 0xd8b   :  { %4715 = vmatprep.subr.mxu0 %v4944_v5 }
 0xd8c   :  { %4716 = vmatpush3.msra.mxu0 %v5999_v4 }
 0xd8d   :  { %4717 = vmatprep.subr.mxu0 %v4944_v5 }
 0xd8e   :  { %4718 = vmatpush3.msra.mxu0 %v6006_v6 }
 0xd8f   :  { %4720 = vmatmul.mubr.msk.f32.vlgmr.msra.gmra.mxu0 %vm2404_vm3, %v3031_v32  ;;  %4733 = vmatprep.subr.mxu0 %v4944_v5 }
 0xd90   :  { %4734 = vmatpush3.msra.mxu0 %v5987_v2  ;;  %4741 = vmatprep.mubr.msk.f32.mxu0 %vm4945_vm0, %v4944_v5 }
 0xd91   :  { %4735 = vmatprep.subr.mxu0 %v4944_v5 }
 0xd92   :  { %4736 = vmatpush3.msra.mxu0 %v5992_v3 }
 0xd93   :  { %4737 = vmatprep.subr.mxu0 %v4944_v5 }
 0xd94   :  { %4738 = vmatpush3.msra.mxu0 %v5999_v4 }
 0xd95   :  { %4739 = vmatprep.subr.mxu0 %v4944_v5 }
 0xd96   :  { %4740 = vmatpush3.msra.mxu0 %v6006_v6 }
 0xd97   :  { %4742 = vmatmul.mubr.msk.f32.vlgmr.msra.gmra.mxu0 %vm2404_vm3, %v3183_v33  ;;  %4755 = vmatprep.subr.mxu0 %v4944_v5 }
 0xd98   :  { %4756 = vmatpush3.msra.mxu0 %v5987_v2  ;;  %4763 = vmatprep.mubr.msk.f32.mxu0 %vm4945_vm0, %v4944_v5 }
 0xd99   :  { %4757 = vmatprep.subr.mxu0 %v4944_v5 }
 0xd9a   :  { %4758 = vmatpush3.msra.mxu0 %v5992_v3 }
 0xd9b   :  { %4759 = vmatprep.subr.mxu0 %v4944_v5 }
 0xd9c   :  { %4760 = vmatpush3.msra.mxu0 %v5999_v4 }
 0xd9d   :  { %4761 = vmatprep.subr.mxu0 %v4944_v5 }
 0xd9e   :  { %4762 = vmatpush3.msra.mxu0 %v6006_v6 }
 0xd9f   :  { %4764 = vmatmul.mubr.msk.f32.vlgmr.msra.gmra.mxu0 %vm2404_vm3, %v3335_v34  ;;  %4777 = vmatprep.subr.mxu0 %v4944_v5 }
 0xda0   :  { %4778 = vmatpush3.msra.mxu0 %v5987_v2  ;;  %4785 = vmatprep.mubr.msk.f32.mxu0 %vm4945_vm0, %v4944_v5 }
 0xda1   :  { %4779 = vmatprep.subr.mxu0 %v4944_v5 }
 0xda2   :  { %4780 = vmatpush3.msra.mxu0 %v5992_v3 }
 0xda3   :  { %4781 = vmatprep.subr.mxu0 %v4944_v5 }
 0xda4   :  { %4782 = vmatpush3.msra.mxu0 %v5999_v4 }
 0xda5   :  { %4783 = vmatprep.subr.mxu0 %v4944_v5 }
 0xda6   :  { %4784 = vmatpush3.msra.mxu0 %v6006_v6 }
 0xda7   :  { %4786 = vmatmul.mubr.msk.f32.vlgmr.msra.gmra.mxu0 %vm2404_vm3, %v3487_v35 }
 0xdbc   :  { %v6115_v36 = vpop.f32.mrf.mxu1 }
 0xdbe   :  { %v4798_v37 = vpop.f32.mrf.mxu1 }
 0xe2f   :  { %v2473_v39 = vpop.f32.mrf.mxu0 }
 0xe30   :  { %v2547_v26 = vadd.f32 %v6015_v12, %v2473_v39 }
 0xe31   :  { %v4633_v29 = vpop.f32.mrf.mxu0 }
 0xe32   :  { %v2556_v40 = vadd.f32 %v6120_v38, %v2547_v26 }
 0xe34   :  { %v2557_v5 = vsub.f32 0.0, %v2556_v40 }
 0xe36   :  { %v2558_v42 = vmul.f32 1.442695, %v2557_v5 }
 0xe37   :  { %v2635_v43 = vpop.f32.mrf.mxu0 }
 0xe38   :  { %4842 = vpow2.f32 %v2558_v42  ;;  %v2709_v44 = vadd.f32 %v6017_v16, %v2635_v43 }
 0xe39   :  { %v4655_v45 = vpop.f32.mrf.mxu0 }
 0xe3a   :  { %v2712_v46 = vadd.f32 %v6120_v38, %v2709_v44 }
 0xe3c   :  { %v2713_v47 = vsub.f32 0.0, %v2712_v46 }
 0xe3e   :  { %v2714_v48 = vmul.f32 1.442695, %v2713_v47 }
 0xe3f   :  { %v2791_v50 = vpop.f32.mrf.mxu0 }
 0xe40   :  { %4844 = vpow2.f32 %v2714_v48  ;;  %v2865_v51 = vadd.f32 %v6022_v60, %v2791_v50 }
 0xe41   :  { %v4677_v52 = vpop.f32.mrf.mxu0 }
 0xe42   :  { %v2868_v53 = vadd.f32 %v6120_v38, %v2865_v51 }
 0xe44   :  { %v2869_v54 = vsub.f32 0.0, %v2868_v53 }
 0xe45   :  { %v4843_v56 = vpop.eup %4842 }
 0xe46   :  { %v2560_v57 = vadd.f32 1.0, %v4843_v56  ;;  %v2870_v55 = vmul.f32 1.442695, %v2869_v54 }
 0xe47   :  { %v2947_v58 = vpop.f32.mrf.mxu0 }
 0xe48   :  { %4846 = vrcp.f32 %v2560_v57  ;;  %v3021_v59 = vadd.f32 %v6030_v15, %v2947_v58 }
 0xe49   :  { %4848 = vpow2.f32 %v2870_v55  ;;  %v4699_v49 = vpop.f32.mrf.mxu0 }
 0xe4a   :  { %v3024_v61 = vadd.f32 %v6120_v38, %v3021_v59 }
 0xe4c   :  { %v3025_v62 = vsub.f32 0.0, %v3024_v61 }
 0xe4d   :  { %v4845_v63 = vpop.eup %4844 }
 0xe4e   :  { %v2716_v0 = vadd.f32 1.0, %v4845_v63  ;;  %v3026_v1 = vmul.f32 1.442695, %v3025_v62 }
 0xe4f   :  { %v3100_v2 = vpop.f32.mrf.mxu0 }
 0xe50   :  { %4850 = vrcp.f32 %v2716_v0  ;;  %v3173_v3 = vadd.f32 %v6032_v20, %v3100_v2 }
 0xe51   :  { %4852 = vpow2.f32 %v3026_v1  ;;  %v4721_v4 = vpop.f32.mrf.mxu0 }
 0xe52   :  { %v3176_v6 = vadd.f32 %v6120_v38, %v3173_v3 }
 0xe54   :  { %v3177_v7 = vsub.f32 0.0, %v3176_v6 }
 0xe55   :  { %v4847_v8 = vpop.eup %4846 }
 0xe56   :  { %v4849_v9 = vpop.eup %4848  ;;  %3639 = vst.msk [vmem:[%s6180_s10] sm:$0xf] %vm3638_vm4, %v4847_v8  ;;  %v3178_v10 = vmul.f32 1.442695, %v3177_v7 }
 0xe57   :  { %v2872_v11 = vadd.f32 1.0, %v4849_v9  ;;  %v3252_v12 = vpop.f32.mrf.mxu0 }
 0xe58   :  { %4854 = vpow2.f32 %v3178_v10  ;;  %v3325_v13 = vadd.f32 %v6034_v23, %v3252_v12 }
 0xe59   :  { %4856 = vrcp.f32 %v2872_v11  ;;  %v4743_v14 = vpop.f32.mrf.mxu0 }
 0xe5a   :  { %v3328_v16 = vadd.f32 %v6120_v38, %v3325_v13 }
 0xe5c   :  { %v3329_v17 = vsub.f32 0.0, %v3328_v16 }
 0xe5d   :  { %v4851_v18 = vpop.eup %4850 }
 0xe5e   :  { %v4853_v60 = vpop.eup %4852  ;;  %3640 = vst.msk [vmem:[%s6180_s10 + $0x4] sm:$0xf] %vm3638_vm4, %v4851_v18  ;;  %v3330_v41 = vmul.f32 1.442695, %v3329_v17 }
 0xe5f   :  { %v3028_v15 = vadd.f32 1.0, %v4853_v60  ;;  %v3404_v19 = vpop.f32.mrf.mxu0 }
 0xe60   :  { %4858 = vpow2.f32 %v3330_v41  ;;  %v3477_v20 = vadd.f32 %v6036_v25, %v3404_v19 }
 0xe61   :  { %4860 = vrcp.f32 %v3028_v15  ;;  %v4765_v21 = vpop.f32.mrf.mxu0 }
 0xe62   :  { %v3480_v23 = vadd.f32 %v6120_v38, %v3477_v20 }
 0xe64   :  { %v3481_v24 = vsub.f32 0.0, %v3480_v23 }
 0xe65   :  { %v4855_v27 = vpop.eup %4854 }
 0xe66   :  { %v4857_v28 = vpop.eup %4856  ;;  %v3180_v22 = vadd.f32 1.0, %v4855_v27  ;;  %v3482_v30 = vmul.f32 1.442695, %v3481_v24 }
 0xe67   :  { %3641 = vst.msk [vmem:[%s6180_s10 + $0x8] sm:$0xf] %vm3638_vm4, %v4857_v28  ;;  %v3556_v31 = vpop.f32.mrf.mxu0 }
 0xe68   :  { %4862 = vrcp.f32 %v3180_v22  ;;  %v3629_v32 = vadd.f32 %v6115_v36, %v3556_v31 }
 0xe69   :  { %4864 = vpow2.f32 %v3482_v30  ;;  %v4787_v25 = vpop.f32.mrf.mxu0 }
 0xe6a   :  { %v3632_v33 = vadd.f32 %v6120_v38, %v3629_v32 }
 0xe6c   :  { %v3633_v34 = vsub.f32 0.0, %v3632_v33 }
 0xe6d   :  { %v4859_v35 = vpop.eup %4858 }
 0xe6e   :  { %v4861_v37 = vpop.eup %4860  ;;  %v3332_v39 = vadd.f32 1.0, %v4859_v35  ;;  %v3634_v26 = vmul.f32 1.442695, %v3633_v34 }
 0xe6f   :  { %3642 = vst.msk [vmem:[%s6180_s10 + $0xc] sm:$0xf] %vm3638_vm4, %v4861_v37 }
 0xe70   :  { %4866 = vrcp.f32 %v3332_v39 }
 0xe71   :  { %4868 = vpow2.f32 %v3634_v26 }
 0xe75   :  { %v4863_v29 = vpop.eup %4862 }
 0xe76   :  { %v4865_v40 = vpop.eup %4864  ;;  %3643 = vst.msk [vmem:[%s6180_s10 + $0x10] sm:$0xf] %vm3638_vm4, %v4863_v29 }
 0xe77   :  { %v3484_v36 = vadd.f32 1.0, %v4865_v40 }
 0xe79   :  { %4870 = vrcp.f32 %v3484_v36 }
 0xe7d   :  { %v4867_v38 = vpop.eup %4866 }
 0xe7e   :  { %v4869_v5 = vpop.eup %4868  ;;  %3644 = vst.msk [vmem:[%s6180_s10 + $0x14] sm:$0xf] %vm3638_vm4, %v4867_v38 }
 0xe7f   :  { %v3636_v42 = vadd.f32 1.0, %v4869_v5 }
 0xe81   :  { %4872 = vrcp.f32 %v3636_v42 }
 0xe86   :  { %v4871_v43 = vpop.eup %4870 }
 0xe87   :  { %3645 = vst.msk [vmem:[%s6180_s10 + $0x18] sm:$0xf] %vm3638_vm4, %v4871_v43 }
 0xe8e   :  { %v4873_v44 = vpop.eup %4872 }
 0xe8f   :  { %3646 = vst.msk [vmem:[%s6180_s10 + $0x1c] sm:$0xf] %vm3638_vm4, %v4873_v44 }
 0xe90   :  { %3651 = vsyncpa [#allocation3], 1 }
 0xe91   :  { %3652 = vsyncpa [#allocation5], 1 }

</bundles_post_ra>
